<compile_context>
chip_gen: v6e
topology: v6e:2x2x1
jax: 0.10.0
libtpu: 0.0.40
codegen_flags: <defaults>
</compile_context>

<pallas_src>
import functools

import jax
import jax.numpy as jnp
from jax import lax
from jax.experimental import pallas as pl
from jax.experimental.pallas import tpu as pltpu


def _lstm_linear_kernel(x_ref, w_enc_ref, w_ih_t_ref, w_hh_t_ref, b_ref,
                        w_lin_t_ref, b_lin_ref, o_ref, xw_ref,
                        *, num_frames, horizon, hidden_size, num_points,
                        out_width):
    """One batch row-block per grid step: encode F frames, decode `horizon` steps."""
    H = hidden_size
    G = 4 * H
    P = num_points
    F = num_frames
    RB = x_ref.shape[0]                       # batch rows in this block

    w_ih_t = w_ih_t_ref[...]                  # (P, 4H)
    w_hh_t = w_hh_t_ref[...]                  # (H, 4H)
    w_lin_t = w_lin_t_ref[...]                # (H, P)

    # Hoisted bias / constant broadcasts (JAX does not CSE broadcast_in_dim
    # inside (unrolled) loops).
    b_b = jnp.broadcast_to(b_ref[...], (RB, G))
    b_lin_b = jnp.broadcast_to(b_lin_ref[...], (RB, P))

    # Lane masks for the combined full-width gate nonlinearity.  Torch gate
    # order is [i, f, g, o]: sigmoid on lanes [0,2H) u [3H,4H), tanh on [2H,3H).
    lane = lax.broadcasted_iota(jnp.int32, (1, G), 1)
    is_sig = (lane < 2 * H) | (lane >= 3 * H)
    act_scale = jnp.broadcast_to(
        jnp.where(is_sig, 0.5, 1.0).astype(jnp.float32), (RB, G))
    act_off = jnp.broadcast_to(
        jnp.where(is_sig, 0.5, 0.0).astype(jnp.float32), (RB, G))

    def gates_to_state(gates, c):
        # sigmoid(x) = 0.5 + 0.5*tanh(0.5*x): ONE full-128-lane EUP tanh covers
        # all four gate slabs instead of a masked sigmoid(3H) + tanh(H).
        t = jnp.tanh(gates * act_scale)
        act = act_off + act_scale * t
        i_g = act[:, 0 * H:1 * H]
        f_g = act[:, 1 * H:2 * H]
        g_g = act[:, 2 * H:3 * H]
        o_g = act[:, 3 * H:4 * H]
        c_new = f_g * c + i_g * g_g
        h_new = o_g * jnp.tanh(c_new)
        return h_new, c_new

    # ---- Encoder input projection, hoisted out of the recurrence -----------
    # Block-diagonal weight => xw[:, t*G:(t+1)*G] == x[:, t, :] @ w_ih.T, laid
    # out as 128-aligned lane slabs in a VMEM scratch.
    xw_ref[...] = jnp.dot(x_ref[...], w_enc_ref[...],
                          preferred_element_type=jnp.float32)

    # ---- Encoder recurrence (static F -> unrolled, static lane slices) ------
    # TODO(synk): for very large F switch to lax.fori_loop with a 128-aligned
    # dynamic pl.ds lane slice to bound program size.
    # TODO(synk): on v5e, pinning w_hh_t via pltpu.matmul_push_rhs/acc_lhs/pop
    # across the serial steps would remove per-step weight-load latency.
    h = jnp.zeros((RB, H), jnp.float32)
    c = jnp.zeros((RB, H), jnp.float32)
    for t in range(F):
        gates = (xw_ref[:, t * G:(t + 1) * G]
                 + jnp.dot(h, w_hh_t, preferred_element_type=jnp.float32)
                 + b_b)
        h, c = gates_to_state(gates, c)

    # ---- Decoder: autoregressive linear readout ------------------------------
    # TODO(synk): for large horizon use lax.fori_loop and stage preds through a
    # VMEM scratch before the single lane-dense output store.
    # TODO(synk): optional bf16 matmul operands (keep f32 states/nonlinearities)
    # for ~3x MXU throughput on v6e/v7x if tolerances allow.
    pred = jnp.dot(h, w_lin_t, preferred_element_type=jnp.float32) + b_lin_b
    preds = [pred]
    for _ in range(1, horizon):
        gates = (jnp.dot(pred, w_ih_t, preferred_element_type=jnp.float32)
                 + jnp.dot(h, w_hh_t, preferred_element_type=jnp.float32)
                 + b_b)
        h, c = gates_to_state(gates, c)
        pred = jnp.dot(h, w_lin_t, preferred_element_type=jnp.float32) + b_lin_b
        preds.append(pred)

    pad = out_width - horizon * P
    if pad > 0:
        preds.append(jnp.zeros((RB, pad), jnp.float32))
    # ONE full-width, lane-dense store per grid step.
    o_ref[...] = jnp.concatenate(preds, axis=1)


def _vmem_capacity_bytes():
    try:
        cap = getattr(pltpu.get_tpu_info(), "vmem_capacity_bytes", None)
        if cap:
            return int(cap)
    except Exception:
        pass
    return 64 * 1024 * 1024            # conservative (v7x-sized) fallback


def _round_up(v, m):
    return -(-v // m) * m


def lstm_linear_forward(x, w_ih, w_hh, b_ih, b_hh, w_lin, b_lin, horizon,
                        block_rows=None):
    """x: (T, S, F, P) float32. Returns (T, S, horizon, P)."""
    T, S, F, P = x.shape
    H = w_hh.shape[1]
    G = 4 * H
    assert w_ih.shape == (G, P) and w_hh.shape == (G, H)
    assert w_lin.shape == (P, H)

    # ---- Generation-aware sizing ---------------------------------------------
    vmem_cap = _vmem_capacity_bytes()
    if block_rows is None:
        # 128 MiB VMEM parts (v5e/v6e) take bigger row-blocks; v7x (64 MiB)
        # prefers smaller blocks (and needs >= 2 blocks for its 2 TensorCores).
        block_rows = 512 if vmem_cap >= 128 * 1024 * 1024 else 256

    # ---- Weight prep (layout plumbing only; torch gate order kept) -----------
    w_ih_t = w_ih.T                                     # (P, 4H)
    w_hh_t = w_hh.T                                     # (H, 4H)
    w_lin_t = w_lin.T                                   # (H, P)
    b = (b_ih + b_hh).reshape(1, G)                     # fused LSTM bias
    b_lin2 = b_lin.reshape(1, P)
    # Block-diagonal encoder projection weight (F*P, F*4H): one matmul produces
    # all per-frame input projections as lane slabs, no HBM transpose of x.
    w_enc = jnp.kron(jnp.eye(F, dtype=jnp.float32), w_ih_t)

    # ---- Fold tasks into the batch dim and block it ---------------------------
    B = T * S
    half_b = _round_up(max(1, -(-B // 2)), 8)           # >= 2 blocks (v7x TCs)
    RB = max(8, min(_round_up(block_rows, 8), half_b))
    B_pad = _round_up(B, RB)
    x_flat = x.reshape(B, F * P)                        # free reshape, no transpose
    if B_pad != B:
        x_flat = jnp.pad(x_flat, ((0, B_pad - B), (0, 0)))
    num_blocks = B_pad // RB

    W_out = _round_up(horizon * P, 128)                 # lane-dense output width

    # ---- VMEM budget (double-buffer every BlockSpec input + scratch) ----------
    f32b = 4
    vmem_need = f32b * (
        2 * RB * F * P            # x block
        + 2 * RB * W_out          # output block
        + 2 * (F * P) * (F * G)   # block-diagonal encoder weight
        + 2 * P * G               # w_ih_t
        + 2 * H * G               # w_hh_t
        + 2 * G                   # fused LSTM bias
        + 2 * H * P               # w_lin_t
        + 2 * P                   # linear bias
        + RB * F * G)             # xw scratch
    vmem_limit = int(min(max(2 * vmem_need, 16 * 1024 * 1024),
                         int(0.8 * vmem_cap)))

    kernel = functools.partial(_lstm_linear_kernel, num_frames=F,
                               horizon=horizon, hidden_size=H, num_points=P,
                               out_width=W_out)

    out = pl.pallas_call(
        kernel,
        out_shape=jax.ShapeDtypeStruct((B_pad, W_out), jnp.float32),
        grid_spec=pltpu.PrefetchScalarGridSpec(
            num_scalar_prefetch=0,
            grid=(num_blocks,),
            in_specs=[
                pl.BlockSpec((RB, F * P), lambda i: (i, 0)),
                pl.BlockSpec((F * P, F * G), lambda i: (0, 0)),
                pl.BlockSpec((P, G), lambda i: (0, 0)),
                pl.BlockSpec((H, G), lambda i: (0, 0)),
                pl.BlockSpec((1, G), lambda i: (0, 0)),
                pl.BlockSpec((H, P), lambda i: (0, 0)),
                pl.BlockSpec((1, P), lambda i: (0, 0)),
            ],
            out_specs=pl.BlockSpec((RB, W_out), lambda i: (i, 0)),
            scratch_shapes=[pltpu.VMEM((RB, F * G), jnp.float32)],
        ),
        compiler_params=pltpu.CompilerParams(
            dimension_semantics=("parallel",),
            vmem_limit_bytes=vmem_limit),
    )(x_flat, w_enc, w_ih_t, w_hh_t, b, w_lin_t, b_lin2)

    return out[:B, :horizon * P].reshape(T, S, horizon, P)


def _reference(x, w_ih, w_hh, b_ih, b_hh, w_lin, b_lin, horizon):
    """Pure-JAX reference mirroring the PyTorch module (original gate order)."""
    T, S, F, P = x.shape
    H = w_hh.shape[1]

    def cell(x_t, h, c):
        gates = x_t @ w_ih.T + b_ih + h @ w_hh.T + b_hh
        i, f, g, o = jnp.split(gates, 4, axis=1)
        c = jax.nn.sigmoid(f) * c + jax.nn.sigmoid(i) * jnp.tanh(g)
        h = jax.nn.sigmoid(o) * jnp.tanh(c)
        return h, c

    outs = []
    for k in range(T):
        h = jnp.zeros((S, H), jnp.float32)
        c = jnp.zeros((S, H), jnp.float32)
        for t in range(F):
            h, c = cell(x[k, :, t, :], h, c)
        pred = h @ w_lin.T + b_lin
        steps = [pred]
        for _ in range(horizon - 1):
            h, c = cell(pred, h, c)
            pred = h @ w_lin.T + b_lin
            steps.append(pred)
        outs.append(jnp.stack(steps, axis=1))
    return jnp.stack(outs, axis=0)


if __name__ == "__main__":
    # Small, deterministic problem.
    num_tasks, num_sequences, num_frames = 2, 8, 8
    input_size, hidden_size, horizon = 16, 32, 4

    key = jax.random.PRNGKey(0)
    ks = jax.random.split(key, 7)
    bound = 1.0 / jnp.sqrt(hidden_size)  # torch default init scale

    x = jax.random.normal(ks[0], (num_tasks, num_sequences, num_frames, input_size),
                          dtype=jnp.float32)
    w_ih = jax.random.uniform(ks[1], (4 * hidden_size, input_size),
                              minval=-bound, maxval=bound, dtype=jnp.float32)
    w_hh = jax.random.uniform(ks[2], (4 * hidden_size, hidden_size),
                              minval=-bound, maxval=bound, dtype=jnp.float32)
    b_ih = jax.random.uniform(ks[3], (4 * hidden_size,),
                              minval=-bound, maxval=bound, dtype=jnp.float32)
    b_hh = jax.random.uniform(ks[4], (4 * hidden_size,),
                              minval=-bound, maxval=bound, dtype=jnp.float32)
    w_lin = jax.random.uniform(ks[5], (input_size, hidden_size),
                               minval=-bound, maxval=bound, dtype=jnp.float32)
    b_lin = jax.random.uniform(ks[6], (input_size,),
                               minval=-bound, maxval=bound, dtype=jnp.float32)

    out = lstm_linear_forward(x, w_ih, w_hh, b_ih, b_hh, w_lin, b_lin, horizon)
    out = jax.block_until_ready(out)

    assert out.shape == (num_tasks, num_sequences, horizon, input_size), out.shape

    ref = _reference(x, w_ih, w_hh, b_ih, b_hh, w_lin, b_lin, horizon)
    assert jnp.allclose(out, ref, atol=1e-4, rtol=1e-4), \
        float(jnp.max(jnp.abs(out - ref)))

    print("KERNEL_OK")
</pallas_src>

<mosaic_0001>
module attributes {stable_mosaic.version = 11 : i64} {
  func.func @_lstm_linear_kernel(%arg0: i32, %arg1: memref<8x128xf32, #tpu.memory_space<vmem>>, %arg2: memref<128x1024xf32, #tpu.memory_space<vmem>>, %arg3: memref<16x128xf32, #tpu.memory_space<vmem>>, %arg4: memref<32x128xf32, #tpu.memory_space<vmem>>, %arg5: memref<1x128xf32, #tpu.memory_space<vmem>>, %arg6: memref<32x16xf32, #tpu.memory_space<vmem>>, %arg7: memref<1x16xf32, #tpu.memory_space<vmem>>, %arg8: memref<8x128xf32, #tpu.memory_space<vmem>>, %arg9: memref<8x1024xf32, #tpu.memory_space<vmem>>) attributes {dimension_semantics = [#tpu.dimension_semantics<parallel>], iteration_bounds = array<i64: 2>, scalar_prefetch = 0 : i64, scratch_operands = 1 : i64, tpu.core_type = #tpu.core_type<tc>, window_params = [{transform_indices = @transform_0, window_bounds = array<i64: 8, 128>}, {pipeline_mode = #tpu.pipeline_mode<synchronous>, transform_indices = @transform_1, window_bounds = array<i64: 128, 1024>}, {pipeline_mode = #tpu.pipeline_mode<synchronous>, transform_indices = @transform_2, window_bounds = array<i64: 16, 128>}, {pipeline_mode = #tpu.pipeline_mode<synchronous>, transform_indices = @transform_3, window_bounds = array<i64: 32, 128>}, {pipeline_mode = #tpu.pipeline_mode<synchronous>, transform_indices = @transform_4, window_bounds = array<i64: 1, 128>}, {pipeline_mode = #tpu.pipeline_mode<synchronous>, transform_indices = @transform_5, window_bounds = array<i64: 32, 16>}, {pipeline_mode = #tpu.pipeline_mode<synchronous>, transform_indices = @transform_6, window_bounds = array<i64: 1, 16>}, {transform_indices = @transform_7, window_bounds = array<i64: 8, 128>}]} {
    %c0 = arith.constant 0 : index
    %c0_0 = arith.constant 0 : index
    %0 = vector.load %arg3[%c0, %c0_0] : memref<16x128xf32, #tpu.memory_space<vmem>>, vector<16x128xf32>
    %c0_1 = arith.constant 0 : index
    %c0_2 = arith.constant 0 : index
    %1 = vector.load %arg4[%c0_1, %c0_2] : memref<32x128xf32, #tpu.memory_space<vmem>>, vector<32x128xf32>
    %c0_3 = arith.constant 0 : index
    %c0_4 = arith.constant 0 : index
    %2 = vector.load %arg6[%c0_3, %c0_4] : memref<32x16xf32, #tpu.memory_space<vmem>>, vector<32x16xf32>
    %c0_5 = arith.constant 0 : index
    %c0_6 = arith.constant 0 : index
    %3 = vector.load %arg5[%c0_5, %c0_6] : memref<1x128xf32, #tpu.memory_space<vmem>>, vector<1x128xf32>
    %4 = vector.shape_cast %3 : vector<1x128xf32> to vector<1x128xf32>
    %5 = vector.broadcast %4 : vector<1x128xf32> to vector<8x128xf32>
    %c0_7 = arith.constant 0 : index
    %c0_8 = arith.constant 0 : index
    %6 = vector.load %arg7[%c0_7, %c0_8] : memref<1x16xf32, #tpu.memory_space<vmem>>, vector<1x16xf32>
    %7 = vector.shape_cast %6 : vector<1x16xf32> to vector<1x16xf32>
    %8 = vector.broadcast %7 : vector<1x16xf32> to vector<8x16xf32>
    %9 = tpu.iota {dimensions = array<i32: 1>} : vector<1x128xi32>
    %c64_i32 = arith.constant 64 : i32
    %10 = vector.broadcast %c64_i32 : i32 to vector<1x128xi32>
    %11 = arith.cmpi slt, %9, %10 : vector<1x128xi32>
    %c96_i32 = arith.constant 96 : i32
    %12 = vector.broadcast %c96_i32 : i32 to vector<1x128xi32>
    %13 = arith.cmpi sge, %9, %12 : vector<1x128xi32>
    %14 = arith.ori %11, %13 : vector<1x128xi1>
    %cst = arith.constant 5.000000e-01 : f32
    %cst_9 = arith.constant 1.000000e+00 : f32
    %15 = vector.broadcast %cst : f32 to vector<1x128xf32>
    %16 = vector.broadcast %cst_9 : f32 to vector<1x128xf32>
    %17 = arith.select %14, %15, %16 : vector<1x128xi1>, vector<1x128xf32>
    %18 = vector.shape_cast %17 : vector<1x128xf32> to vector<1x128xf32>
    %19 = vector.broadcast %18 : vector<1x128xf32> to vector<8x128xf32>
    %cst_10 = arith.constant 5.000000e-01 : f32
    %cst_11 = arith.constant 0.000000e+00 : f32
    %20 = vector.broadcast %cst_10 : f32 to vector<1x128xf32>
    %21 = vector.broadcast %cst_11 : f32 to vector<1x128xf32>
    %22 = arith.select %14, %20, %21 : vector<1x128xi1>, vector<1x128xf32>
    %23 = vector.shape_cast %22 : vector<1x128xf32> to vector<1x128xf32>
    %24 = vector.broadcast %23 : vector<1x128xf32> to vector<8x128xf32>
    %c0_12 = arith.constant 0 : index
    %c0_13 = arith.constant 0 : index
    %25 = vector.load %arg1[%c0_12, %c0_13] : memref<8x128xf32, #tpu.memory_space<vmem>>, vector<8x128xf32>
    %c0_14 = arith.constant 0 : index
    %c0_15 = arith.constant 0 : index
    %26 = vector.load %arg2[%c0_14, %c0_15] : memref<128x1024xf32, #tpu.memory_space<vmem>>, vector<128x1024xf32>
    %cst_16 = arith.constant dense<0.000000e+00> : vector<8x1024xf32>
    %27 = tpu.matmul %25, %26, %cst_16 {dimension_numbers = #tpu.dot_dimension_numbers<[1], [0], [0], [1], [0, 0, 1, 1], [], []>} : vector<8x128xf32>, vector<128x1024xf32>, vector<8x1024xf32> -> vector<8x1024xf32>
    %c0_17 = arith.constant 0 : index
    %c0_18 = arith.constant 0 : index
    %28 = vector.load %arg9[%c0_17, %c0_18] : memref<8x1024xf32, #tpu.memory_space<vmem>>, vector<8x1024xf32>
    tpu.vector_store %arg9[%c0_17, %c0_18], %27 {strides = array<i32>} : memref<8x1024xf32, #tpu.memory_space<vmem>>, vector<8x1024xf32>,
    %cst_19 = arith.constant 0.000000e+00 : f32
    %29 = vector.broadcast %cst_19 : f32 to vector<8x32xf32>
    %cst_20 = arith.constant 0.000000e+00 : f32
    %30 = vector.broadcast %cst_20 : f32 to vector<8x32xf32>
    %c0_21 = arith.constant 0 : index
    %c0_22 = arith.constant 0 : index
    %31 = vector.load %arg9[%c0_21, %c0_22] : memref<8x1024xf32, #tpu.memory_space<vmem>>, vector<8x128xf32>
    %cst_23 = arith.constant dense<0.000000e+00> : vector<8x128xf32>
    %32 = tpu.matmul %29, %1, %cst_23 {dimension_numbers = #tpu.dot_dimension_numbers<[1], [0], [0], [1], [0, 0, 1, 1], [], []>} : vector<8x32xf32>, vector<32x128xf32>, vector<8x128xf32> -> vector<8x128xf32>
    %33 = arith.addf %31, %32 : vector<8x128xf32>
    %34 = arith.addf %33, %5 : vector<8x128xf32>
    %35 = arith.mulf %34, %19 : vector<8x128xf32>
    %36 = math.tanh %35 : vector<8x128xf32>
    %37 = arith.mulf %19, %36 : vector<8x128xf32>
    %38 = arith.addf %24, %37 : vector<8x128xf32>
    %39 = vector.extract_strided_slice %38 {offsets = [0, 0], sizes = [8, 32], strides = [1, 1]} : vector<8x128xf32> to vector<8x32xf32>
    %40 = vector.extract_strided_slice %38 {offsets = [0, 32], sizes = [8, 32], strides = [1, 1]} : vector<8x128xf32> to vector<8x32xf32>
    %41 = vector.extract_strided_slice %38 {offsets = [0, 64], sizes = [8, 32], strides = [1, 1]} : vector<8x128xf32> to vector<8x32xf32>
    %42 = vector.extract_strided_slice %38 {offsets = [0, 96], sizes = [8, 32], strides = [1, 1]} : vector<8x128xf32> to vector<8x32xf32>
    %43 = arith.mulf %40, %30 : vector<8x32xf32>
    %44 = arith.mulf %39, %41 : vector<8x32xf32>
    %45 = arith.addf %43, %44 : vector<8x32xf32>
    %46 = math.tanh %45 : vector<8x32xf32>
    %47 = arith.mulf %42, %46 : vector<8x32xf32>
    %c0_24 = arith.constant 0 : index
    %c128 = arith.constant 128 : index
    %48 = vector.load %arg9[%c0_24, %c128] : memref<8x1024xf32, #tpu.memory_space<vmem>>, vector<8x128xf32>
    %cst_25 = arith.constant dense<0.000000e+00> : vector<8x128xf32>
    %49 = tpu.matmul %47, %1, %cst_25 {dimension_numbers = #tpu.dot_dimension_numbers<[1], [0], [0], [1], [0, 0, 1, 1], [], []>} : vector<8x32xf32>, vector<32x128xf32>, vector<8x128xf32> -> vector<8x128xf32>
    %50 = arith.addf %48, %49 : vector<8x128xf32>
    %51 = arith.addf %50, %5 : vector<8x128xf32>
    %52 = arith.mulf %51, %19 : vector<8x128xf32>
    %53 = math.tanh %52 : vector<8x128xf32>
    %54 = arith.mulf %19, %53 : vector<8x128xf32>
    %55 = arith.addf %24, %54 : vector<8x128xf32>
    %56 = vector.extract_strided_slice %55 {offsets = [0, 0], sizes = [8, 32], strides = [1, 1]} : vector<8x128xf32> to vector<8x32xf32>
    %57 = vector.extract_strided_slice %55 {offsets = [0, 32], sizes = [8, 32], strides = [1, 1]} : vector<8x128xf32> to vector<8x32xf32>
    %58 = vector.extract_strided_slice %55 {offsets = [0, 64], sizes = [8, 32], strides = [1, 1]} : vector<8x128xf32> to vector<8x32xf32>
    %59 = vector.extract_strided_slice %55 {offsets = [0, 96], sizes = [8, 32], strides = [1, 1]} : vector<8x128xf32> to vector<8x32xf32>
    %60 = arith.mulf %57, %45 : vector<8x32xf32>
    %61 = arith.mulf %56, %58 : vector<8x32xf32>
    %62 = arith.addf %60, %61 : vector<8x32xf32>
    %63 = math.tanh %62 : vector<8x32xf32>
    %64 = arith.mulf %59, %63 : vector<8x32xf32>
    %c0_26 = arith.constant 0 : index
    %c256 = arith.constant 256 : index
    %65 = vector.load %arg9[%c0_26, %c256] : memref<8x1024xf32, #tpu.memory_space<vmem>>, vector<8x128xf32>
    %cst_27 = arith.constant dense<0.000000e+00> : vector<8x128xf32>
    %66 = tpu.matmul %64, %1, %cst_27 {dimension_numbers = #tpu.dot_dimension_numbers<[1], [0], [0], [1], [0, 0, 1, 1], [], []>} : vector<8x32xf32>, vector<32x128xf32>, vector<8x128xf32> -> vector<8x128xf32>
    %67 = arith.addf %65, %66 : vector<8x128xf32>
    %68 = arith.addf %67, %5 : vector<8x128xf32>
    %69 = arith.mulf %68, %19 : vector<8x128xf32>
    %70 = math.tanh %69 : vector<8x128xf32>
    %71 = arith.mulf %19, %70 : vector<8x128xf32>
    %72 = arith.addf %24, %71 : vector<8x128xf32>
    %73 = vector.extract_strided_slice %72 {offsets = [0, 0], sizes = [8, 32], strides = [1, 1]} : vector<8x128xf32> to vector<8x32xf32>
    %74 = vector.extract_strided_slice %72 {offsets = [0, 32], sizes = [8, 32], strides = [1, 1]} : vector<8x128xf32> to vector<8x32xf32>
    %75 = vector.extract_strided_slice %72 {offsets = [0, 64], sizes = [8, 32], strides = [1, 1]} : vector<8x128xf32> to vector<8x32xf32>
    %76 = vector.extract_strided_slice %72 {offsets = [0, 96], sizes = [8, 32], strides = [1, 1]} : vector<8x128xf32> to vector<8x32xf32>
    %77 = arith.mulf %74, %62 : vector<8x32xf32>
    %78 = arith.mulf %73, %75 : vector<8x32xf32>
    %79 = arith.addf %77, %78 : vector<8x32xf32>
    %80 = math.tanh %79 : vector<8x32xf32>
    %81 = arith.mulf %76, %80 : vector<8x32xf32>
    %c0_28 = arith.constant 0 : index
    %c384 = arith.constant 384 : index
    %82 = vector.load %arg9[%c0_28, %c384] : memref<8x1024xf32, #tpu.memory_space<vmem>>, vector<8x128xf32>
    %cst_29 = arith.constant dense<0.000000e+00> : vector<8x128xf32>
    %83 = tpu.matmul %81, %1, %cst_29 {dimension_numbers = #tpu.dot_dimension_numbers<[1], [0], [0], [1], [0, 0, 1, 1], [], []>} : vector<8x32xf32>, vector<32x128xf32>, vector<8x128xf32> -> vector<8x128xf32>
    %84 = arith.addf %82, %83 : vector<8x128xf32>
    %85 = arith.addf %84, %5 : vector<8x128xf32>
    %86 = arith.mulf %85, %19 : vector<8x128xf32>
    %87 = math.tanh %86 : vector<8x128xf32>
    %88 = arith.mulf %19, %87 : vector<8x128xf32>
    %89 = arith.addf %24, %88 : vector<8x128xf32>
    %90 = vector.extract_strided_slice %89 {offsets = [0, 0], sizes = [8, 32], strides = [1, 1]} : vector<8x128xf32> to vector<8x32xf32>
    %91 = vector.extract_strided_slice %89 {offsets = [0, 32], sizes = [8, 32], strides = [1, 1]} : vector<8x128xf32> to vector<8x32xf32>
    %92 = vector.extract_strided_slice %89 {offsets = [0, 64], sizes = [8, 32], strides = [1, 1]} : vector<8x128xf32> to vector<8x32xf32>
    %93 = vector.extract_strided_slice %89 {offsets = [0, 96], sizes = [8, 32], strides = [1, 1]} : vector<8x128xf32> to vector<8x32xf32>
    %94 = arith.mulf %91, %79 : vector<8x32xf32>
    %95 = arith.mulf %90, %92 : vector<8x32xf32>
    %96 = arith.addf %94, %95 : vector<8x32xf32>
    %97 = math.tanh %96 : vector<8x32xf32>
    %98 = arith.mulf %93, %97 : vector<8x32xf32>
    %c0_30 = arith.constant 0 : index
    %c512 = arith.constant 512 : index
    %99 = vector.load %arg9[%c0_30, %c512] : memref<8x1024xf32, #tpu.memory_space<vmem>>, vector<8x128xf32>
    %cst_31 = arith.constant dense<0.000000e+00> : vector<8x128xf32>
    %100 = tpu.matmul %98, %1, %cst_31 {dimension_numbers = #tpu.dot_dimension_numbers<[1], [0], [0], [1], [0, 0, 1, 1], [], []>} : vector<8x32xf32>, vector<32x128xf32>, vector<8x128xf32> -> vector<8x128xf32>
    %101 = arith.addf %99, %100 : vector<8x128xf32>
    %102 = arith.addf %101, %5 : vector<8x128xf32>
    %103 = arith.mulf %102, %19 : vector<8x128xf32>
    %104 = math.tanh %103 : vector<8x128xf32>
    %105 = arith.mulf %19, %104 : vector<8x128xf32>
    %106 = arith.addf %24, %105 : vector<8x128xf32>
    %107 = vector.extract_strided_slice %106 {offsets = [0, 0], sizes = [8, 32], strides = [1, 1]} : vector<8x128xf32> to vector<8x32xf32>
    %108 = vector.extract_strided_slice %106 {offsets = [0, 32], sizes = [8, 32], strides = [1, 1]} : vector<8x128xf32> to vector<8x32xf32>
    %109 = vector.extract_strided_slice %106 {offsets = [0, 64], sizes = [8, 32], strides = [1, 1]} : vector<8x128xf32> to vector<8x32xf32>
    %110 = vector.extract_strided_slice %106 {offsets = [0, 96], sizes = [8, 32], strides = [1, 1]} : vector<8x128xf32> to vector<8x32xf32>
    %111 = arith.mulf %108, %96 : vector<8x32xf32>
    %112 = arith.mulf %107, %109 : vector<8x32xf32>
    %113 = arith.addf %111, %112 : vector<8x32xf32>
    %114 = math.tanh %113 : vector<8x32xf32>
    %115 = arith.mulf %110, %114 : vector<8x32xf32>
    %c0_32 = arith.constant 0 : index
    %c640 = arith.constant 640 : index
    %116 = vector.load %arg9[%c0_32, %c640] : memref<8x1024xf32, #tpu.memory_space<vmem>>, vector<8x128xf32>
    %cst_33 = arith.constant dense<0.000000e+00> : vector<8x128xf32>
    %117 = tpu.matmul %115, %1, %cst_33 {dimension_numbers = #tpu.dot_dimension_numbers<[1], [0], [0], [1], [0, 0, 1, 1], [], []>} : vector<8x32xf32>, vector<32x128xf32>, vector<8x128xf32> -> vector<8x128xf32>
    %118 = arith.addf %116, %117 : vector<8x128xf32>
    %119 = arith.addf %118, %5 : vector<8x128xf32>
    %120 = arith.mulf %119, %19 : vector<8x128xf32>
    %121 = math.tanh %120 : vector<8x128xf32>
    %122 = arith.mulf %19, %121 : vector<8x128xf32>
    %123 = arith.addf %24, %122 : vector<8x128xf32>
    %124 = vector.extract_strided_slice %123 {offsets = [0, 0], sizes = [8, 32], strides = [1, 1]} : vector<8x128xf32> to vector<8x32xf32>
    %125 = vector.extract_strided_slice %123 {offsets = [0, 32], sizes = [8, 32], strides = [1, 1]} : vector<8x128xf32> to vector<8x32xf32>
    %126 = vector.extract_strided_slice %123 {offsets = [0, 64], sizes = [8, 32], strides = [1, 1]} : vector<8x128xf32> to vector<8x32xf32>
    %127 = vector.extract_strided_slice %123 {offsets = [0, 96], sizes = [8, 32], strides = [1, 1]} : vector<8x128xf32> to vector<8x32xf32>
    %128 = arith.mulf %125, %113 : vector<8x32xf32>
    %129 = arith.mulf %124, %126 : vector<8x32xf32>
    %130 = arith.addf %128, %129 : vector<8x32xf32>
    %131 = math.tanh %130 : vector<8x32xf32>
    %132 = arith.mulf %127, %131 : vector<8x32xf32>
    %c0_34 = arith.constant 0 : index
    %c768 = arith.constant 768 : index
    %133 = vector.load %arg9[%c0_34, %c768] : memref<8x1024xf32, #tpu.memory_space<vmem>>, vector<8x128xf32>
    %cst_35 = arith.constant dense<0.000000e+00> : vector<8x128xf32>
    %134 = tpu.matmul %132, %1, %cst_35 {dimension_numbers = #tpu.dot_dimension_numbers<[1], [0], [0], [1], [0, 0, 1, 1], [], []>} : vector<8x32xf32>, vector<32x128xf32>, vector<8x128xf32> -> vector<8x128xf32>
    %135 = arith.addf %133, %134 : vector<8x128xf32>
    %136 = arith.addf %135, %5 : vector<8x128xf32>
    %137 = arith.mulf %136, %19 : vector<8x128xf32>
    %138 = math.tanh %137 : vector<8x128xf32>
    %139 = arith.mulf %19, %138 : vector<8x128xf32>
    %140 = arith.addf %24, %139 : vector<8x128xf32>
    %141 = vector.extract_strided_slice %140 {offsets = [0, 0], sizes = [8, 32], strides = [1, 1]} : vector<8x128xf32> to vector<8x32xf32>
    %142 = vector.extract_strided_slice %140 {offsets = [0, 32], sizes = [8, 32], strides = [1, 1]} : vector<8x128xf32> to vector<8x32xf32>
    %143 = vector.extract_strided_slice %140 {offsets = [0, 64], sizes = [8, 32], strides = [1, 1]} : vector<8x128xf32> to vector<8x32xf32>
    %144 = vector.extract_strided_slice %140 {offsets = [0, 96], sizes = [8, 32], strides = [1, 1]} : vector<8x128xf32> to vector<8x32xf32>
    %145 = arith.mulf %142, %130 : vector<8x32xf32>
    %146 = arith.mulf %141, %143 : vector<8x32xf32>
    %147 = arith.addf %145, %146 : vector<8x32xf32>
    %148 = math.tanh %147 : vector<8x32xf32>
    %149 = arith.mulf %144, %148 : vector<8x32xf32>
    %c0_36 = arith.constant 0 : index
    %c896 = arith.constant 896 : index
    %150 = vector.load %arg9[%c0_36, %c896] : memref<8x1024xf32, #tpu.memory_space<vmem>>, vector<8x128xf32>
    %cst_37 = arith.constant dense<0.000000e+00> : vector<8x128xf32>
    %151 = tpu.matmul %149, %1, %cst_37 {dimension_numbers = #tpu.dot_dimension_numbers<[1], [0], [0], [1], [0, 0, 1, 1], [], []>} : vector<8x32xf32>, vector<32x128xf32>, vector<8x128xf32> -> vector<8x128xf32>
    %152 = arith.addf %150, %151 : vector<8x128xf32>
    %153 = arith.addf %152, %5 : vector<8x128xf32>
    %154 = arith.mulf %153, %19 : vector<8x128xf32>
    %155 = math.tanh %154 : vector<8x128xf32>
    %156 = arith.mulf %19, %155 : vector<8x128xf32>
    %157 = arith.addf %24, %156 : vector<8x128xf32>
    %158 = vector.extract_strided_slice %157 {offsets = [0, 0], sizes = [8, 32], strides = [1, 1]} : vector<8x128xf32> to vector<8x32xf32>
    %159 = vector.extract_strided_slice %157 {offsets = [0, 32], sizes = [8, 32], strides = [1, 1]} : vector<8x128xf32> to vector<8x32xf32>
    %160 = vector.extract_strided_slice %157 {offsets = [0, 64], sizes = [8, 32], strides = [1, 1]} : vector<8x128xf32> to vector<8x32xf32>
    %161 = vector.extract_strided_slice %157 {offsets = [0, 96], sizes = [8, 32], strides = [1, 1]} : vector<8x128xf32> to vector<8x32xf32>
    %162 = arith.mulf %159, %147 : vector<8x32xf32>
    %163 = arith.mulf %158, %160 : vector<8x32xf32>
    %164 = arith.addf %162, %163 : vector<8x32xf32>
    %165 = math.tanh %164 : vector<8x32xf32>
    %166 = arith.mulf %161, %165 : vector<8x32xf32>
    %cst_38 = arith.constant dense<0.000000e+00> : vector<8x16xf32>
    %167 = tpu.matmul %166, %2, %cst_38 {dimension_numbers = #tpu.dot_dimension_numbers<[1], [0], [0], [1], [0, 0, 1, 1], [], []>} : vector<8x32xf32>, vector<32x16xf32>, vector<8x16xf32> -> vector<8x16xf32>
    %168 = arith.addf %167, %8 : vector<8x16xf32>
    %cst_39 = arith.constant dense<0.000000e+00> : vector<8x128xf32>
    %169 = tpu.matmul %168, %0, %cst_39 {dimension_numbers = #tpu.dot_dimension_numbers<[1], [0], [0], [1], [0, 0, 1, 1], [], []>} : vector<8x16xf32>, vector<16x128xf32>, vector<8x128xf32> -> vector<8x128xf32>
    %cst_40 = arith.constant dense<0.000000e+00> : vector<8x128xf32>
    %170 = tpu.matmul %166, %1, %cst_40 {dimension_numbers = #tpu.dot_dimension_numbers<[1], [0], [0], [1], [0, 0, 1, 1], [], []>} : vector<8x32xf32>, vector<32x128xf32>, vector<8x128xf32> -> vector<8x128xf32>
    %171 = arith.addf %169, %170 : vector<8x128xf32>
    %172 = arith.addf %171, %5 : vector<8x128xf32>
    %173 = arith.mulf %172, %19 : vector<8x128xf32>
    %174 = math.tanh %173 : vector<8x128xf32>
    %175 = arith.mulf %19, %174 : vector<8x128xf32>
    %176 = arith.addf %24, %175 : vector<8x128xf32>
    %177 = vector.extract_strided_slice %176 {offsets = [0, 0], sizes = [8, 32], strides = [1, 1]} : vector<8x128xf32> to vector<8x32xf32>
    %178 = vector.extract_strided_slice %176 {offsets = [0, 32], sizes = [8, 32], strides = [1, 1]} : vector<8x128xf32> to vector<8x32xf32>
    %179 = vector.extract_strided_slice %176 {offsets = [0, 64], sizes = [8, 32], strides = [1, 1]} : vector<8x128xf32> to vector<8x32xf32>
    %180 = vector.extract_strided_slice %176 {offsets = [0, 96], sizes = [8, 32], strides = [1, 1]} : vector<8x128xf32> to vector<8x32xf32>
    %181 = arith.mulf %178, %164 : vector<8x32xf32>
    %182 = arith.mulf %177, %179 : vector<8x32xf32>
    %183 = arith.addf %181, %182 : vector<8x32xf32>
    %184 = math.tanh %183 : vector<8x32xf32>
    %185 = arith.mulf %180, %184 : vector<8x32xf32>
    %cst_41 = arith.constant dense<0.000000e+00> : vector<8x16xf32>
    %186 = tpu.matmul %185, %2, %cst_41 {dimension_numbers = #tpu.dot_dimension_numbers<[1], [0], [0], [1], [0, 0, 1, 1], [], []>} : vector<8x32xf32>, vector<32x16xf32>, vector<8x16xf32> -> vector<8x16xf32>
    %187 = arith.addf %186, %8 : vector<8x16xf32>
    %cst_42 = arith.constant dense<0.000000e+00> : vector<8x128xf32>
    %188 = tpu.matmul %187, %0, %cst_42 {dimension_numbers = #tpu.dot_dimension_numbers<[1], [0], [0], [1], [0, 0, 1, 1], [], []>} : vector<8x16xf32>, vector<16x128xf32>, vector<8x128xf32> -> vector<8x128xf32>
    %cst_43 = arith.constant dense<0.000000e+00> : vector<8x128xf32>
    %189 = tpu.matmul %185, %1, %cst_43 {dimension_numbers = #tpu.dot_dimension_numbers<[1], [0], [0], [1], [0, 0, 1, 1], [], []>} : vector<8x32xf32>, vector<32x128xf32>, vector<8x128xf32> -> vector<8x128xf32>
    %190 = arith.addf %188, %189 : vector<8x128xf32>
    %191 = arith.addf %190, %5 : vector<8x128xf32>
    %192 = arith.mulf %191, %19 : vector<8x128xf32>
    %193 = math.tanh %192 : vector<8x128xf32>
    %194 = arith.mulf %19, %193 : vector<8x128xf32>
    %195 = arith.addf %24, %194 : vector<8x128xf32>
    %196 = vector.extract_strided_slice %195 {offsets = [0, 0], sizes = [8, 32], strides = [1, 1]} : vector<8x128xf32> to vector<8x32xf32>
    %197 = vector.extract_strided_slice %195 {offsets = [0, 32], sizes = [8, 32], strides = [1, 1]} : vector<8x128xf32> to vector<8x32xf32>
    %198 = vector.extract_strided_slice %195 {offsets = [0, 64], sizes = [8, 32], strides = [1, 1]} : vector<8x128xf32> to vector<8x32xf32>
    %199 = vector.extract_strided_slice %195 {offsets = [0, 96], sizes = [8, 32], strides = [1, 1]} : vector<8x128xf32> to vector<8x32xf32>
    %200 = arith.mulf %197, %183 : vector<8x32xf32>
    %201 = arith.mulf %196, %198 : vector<8x32xf32>
    %202 = arith.addf %200, %201 : vector<8x32xf32>
    %203 = math.tanh %202 : vector<8x32xf32>
    %204 = arith.mulf %199, %203 : vector<8x32xf32>
    %cst_44 = arith.constant dense<0.000000e+00> : vector<8x16xf32>
    %205 = tpu.matmul %204, %2, %cst_44 {dimension_numbers = #tpu.dot_dimension_numbers<[1], [0], [0], [1], [0, 0, 1, 1], [], []>} : vector<8x32xf32>, vector<32x16xf32>, vector<8x16xf32> -> vector<8x16xf32>
    %206 = arith.addf %205, %8 : vector<8x16xf32>
    %cst_45 = arith.constant dense<0.000000e+00> : vector<8x128xf32>
    %207 = tpu.matmul %206, %0, %cst_45 {dimension_numbers = #tpu.dot_dimension_numbers<[1], [0], [0], [1], [0, 0, 1, 1], [], []>} : vector<8x16xf32>, vector<16x128xf32>, vector<8x128xf32> -> vector<8x128xf32>
    %cst_46 = arith.constant dense<0.000000e+00> : vector<8x128xf32>
    %208 = tpu.matmul %204, %1, %cst_46 {dimension_numbers = #tpu.dot_dimension_numbers<[1], [0], [0], [1], [0, 0, 1, 1], [], []>} : vector<8x32xf32>, vector<32x128xf32>, vector<8x128xf32> -> vector<8x128xf32>
    %209 = arith.addf %207, %208 : vector<8x128xf32>
    %210 = arith.addf %209, %5 : vector<8x128xf32>
    %211 = arith.mulf %210, %19 : vector<8x128xf32>
    %212 = math.tanh %211 : vector<8x128xf32>
    %213 = arith.mulf %19, %212 : vector<8x128xf32>
    %214 = arith.addf %24, %213 : vector<8x128xf32>
    %215 = vector.extract_strided_slice %214 {offsets = [0, 0], sizes = [8, 32], strides = [1, 1]} : vector<8x128xf32> to vector<8x32xf32>
    %216 = vector.extract_strided_slice %214 {offsets = [0, 32], sizes = [8, 32], strides = [1, 1]} : vector<8x128xf32> to vector<8x32xf32>
    %217 = vector.extract_strided_slice %214 {offsets = [0, 64], sizes = [8, 32], strides = [1, 1]} : vector<8x128xf32> to vector<8x32xf32>
    %218 = vector.extract_strided_slice %214 {offsets = [0, 96], sizes = [8, 32], strides = [1, 1]} : vector<8x128xf32> to vector<8x32xf32>
    %219 = arith.mulf %216, %202 : vector<8x32xf32>
    %220 = arith.mulf %215, %217 : vector<8x32xf32>
    %221 = arith.addf %219, %220 : vector<8x32xf32>
    %222 = math.tanh %221 : vector<8x32xf32>
    %223 = arith.mulf %218, %222 : vector<8x32xf32>
    %cst_47 = arith.constant dense<0.000000e+00> : vector<8x16xf32>
    %224 = tpu.matmul %223, %2, %cst_47 {dimension_numbers = #tpu.dot_dimension_numbers<[1], [0], [0], [1], [0, 0, 1, 1], [], []>} : vector<8x32xf32>, vector<32x16xf32>, vector<8x16xf32> -> vector<8x16xf32>
    %225 = arith.addf %224, %8 : vector<8x16xf32>
    %cst_48 = arith.constant 0.000000e+00 : f32
    %226 = vector.broadcast %cst_48 : f32 to vector<8x64xf32>
    %227 = tpu.concatenate %168, %187, %206, %225, %226 in 1 : vector<8x16xf32>, vector<8x16xf32>, vector<8x16xf32>, vector<8x16xf32>, vector<8x64xf32> -> vector<8x128xf32>
    %c0_49 = arith.constant 0 : index
    %c0_50 = arith.constant 0 : index
    %228 = vector.load %arg8[%c0_49, %c0_50] : memref<8x128xf32, #tpu.memory_space<vmem>>, vector<8x128xf32>
    tpu.vector_store %arg8[%c0_49, %c0_50], %227 {strides = array<i32>} : memref<8x128xf32, #tpu.memory_space<vmem>>, vector<8x128xf32>,
    return
  }
  func.func @transform_0(%arg0: i32) -> (i32, i32) {
    %c0_i32 = arith.constant 0 : i32
    %c0_i32_0 = arith.constant 0 : i32
    return %arg0, %c0_i32 : i32, i32
  }
  func.func @transform_1(%arg0: i32) -> (i32, i32) {
    %c0_i32 = arith.constant 0 : i32
    %c0_i32_0 = arith.constant 0 : i32
    %c0_i32_1 = arith.constant 0 : i32
    return %c0_i32, %c0_i32_0 : i32, i32
  }
  func.func @transform_2(%arg0: i32) -> (i32, i32) {
    %c0_i32 = arith.constant 0 : i32
    %c0_i32_0 = arith.constant 0 : i32
    %c0_i32_1 = arith.constant 0 : i32
    return %c0_i32, %c0_i32_0 : i32, i32
  }
  func.func @transform_3(%arg0: i32) -> (i32, i32) {
    %c0_i32 = arith.constant 0 : i32
    %c0_i32_0 = arith.constant 0 : i32
    %c0_i32_1 = arith.constant 0 : i32
    return %c0_i32, %c0_i32_0 : i32, i32
  }
  func.func @transform_4(%arg0: i32) -> (i32, i32) {
    %c0_i32 = arith.constant 0 : i32
    %c0_i32_0 = arith.constant 0 : i32
    %c0_i32_1 = arith.constant 0 : i32
    return %c0_i32, %c0_i32_0 : i32, i32
  }
  func.func @transform_5(%arg0: i32) -> (i32, i32) {
    %c0_i32 = arith.constant 0 : i32
    %c0_i32_0 = arith.constant 0 : i32
    %c0_i32_1 = arith.constant 0 : i32
    return %c0_i32, %c0_i32_0 : i32, i32
  }
  func.func @transform_6(%arg0: i32) -> (i32, i32) {
    %c0_i32 = arith.constant 0 : i32
    %c0_i32_0 = arith.constant 0 : i32
    %c0_i32_1 = arith.constant 0 : i32
    return %c0_i32, %c0_i32_0 : i32, i32
  }
  func.func @transform_7(%arg0: i32) -> (i32, i32) {
    %c0_i32 = arith.constant 0 : i32
    %c0_i32_0 = arith.constant 0 : i32
    return %arg0, %c0_i32 : i32, i32
  }
}

</mosaic_0001>

<bundles_post_ra>
// kernel: tpu_custom_call.1
= control target key start
LH: loop header
LB: loop body
LE: loop exit
PB: predicated region body
PF: predicated region fallthrough
CT: control target
= control target key end

     0   :  { %12 = vsyncpa [#allocation4], 0  ;;  %s3588_s0 = inlined_call_operand.vmem [shape: f32[16,128], index: 0, kind: input, shape index: {}]   ;;  %s3589_s1 = inlined_call_operand.hbm [shape: f32[128,1024], index: 1, kind: input, shape index: {}]   ;;  %s3590_s2 = inlined_call_operand.hbm [shape: f32[16,128], index: 2, kind: input, shape index: {}]   ;;  %s3591_s3 = inlined_call_operand.vmem [shape: f32[32,128], index: 3, kind: input, shape index: {}]   ;;  %s3592_s4 = inlined_call_operand.vmem [shape: f32[1,128], index: 4, kind: input, shape index: {}]   ;;  %s3593_s5 = inlined_call_operand.vmem [shape: f32[32,16], index: 5, kind: input, shape index: {}]   ;;  %s3594_s6 = inlined_call_operand.vmem [shape: f32[1,16], index: 6, kind: input, shape index: {}]   ;;  %s3595_s7 = inlined_call_operand.hbm [shape: f32[16,128], index: 7, kind: output, shape index: {}]  }
   0x1   :  { %13 = vsyncpa [#allocation7], 0 }
   0x2   :  { %14 = vsyncpa [#allocation5], 0 }
   0x3   :  { %16 = vsyncpa [#allocation5 + $0x1], 0  ;;  %s3054_s24 = smov 0   ;;  %s3056_s25 = smov 0  }
   0x4   :  { %s3058_s26 = smov 0   ;;  %s3060_s27 = smov 0  }
   0x5 LB: > { %s3075_s28 = sadd.s32 4294967295, %s2998_s27   ;;  %s2455_s29 = sadd.s32 4294967294, %s2998_s27   ;;  %s2998_s27 = sphi %s3060_s27, %s3609_s27   ;;  %s2994_s26 = sphi %s3058_s26, %s3608_s26   ;;  %s2990_s25 = sphi %s3056_s25, %s3607_s25   ;;  %s2986_s24 = sphi %s3054_s24, %s3606_s24  }
   0x6   : > { %s3079_s30 = sadd.s32 1, %s2998_s27   ;;  %s181_s8 = sadd.s32 1, %s2994_s26 }
   0x7   : > { %s178_s9 = ssub.s32 %s2998_s27, %s3079_s30  ;;  %p191_p0 = scmp.ne.s32.totalorder %s2994_s26, %s2990_s25 }
   0x8   : > { %p179_p1 = scmp.eq.s32.totalorder %s178_s9, 0  ;;  %p192_p2 = scmp.eq.s32.totalorder %s3075_s28, 1 }
   0x9   : > { %p197_p3 = scmp.ne.s32.totalorder %s2990_s25, %s2986_s24  ;;  %p198_p4 = scmp.eq.s32.totalorder %s2455_s29, 1 }
   0xa   : > { %s3090_s10 = scalar_select %p179_p1, %s2994_s26, %s181_s8  }
   0xb   : > { %p3092_p5 = por %p192_p2, %p191_p0  ;;  %p3096_p6 = por %p198_p4, %p197_p3 }
   0xc   : > { %p2456_p7 = scmp.ge.s32.totalorder %s2998_s27, 1  ;;  %p205_p8 = scmp.lt.s32.totalorder %s2998_s27, 3 }
   0xd   : > { %s3598_s12 = scalar_select %p3096_p6, 1, 0 }
   0xe   : > { %p3596_p9 = scmp.eq.s32.totalorder %s3075_s28, 0  ;;  %p3103_p10 = pnand %p2456_p7, %p205_p8 }
   0xf   : > { %s3000_s14 = smov [#allocation3]   ;;  %s3001_s17 = smov [#allocation6]  }
  0x10   : > { %s217_s15 = sshll.u32 %s3000_s14, 4  ;;  %p2768_p11 = pneg %p3103_p10  ;;  %s218_s15 = int_to_ptr.vmem [resolvable:$true] %s217_s15 }
  0x11   : > { %s230_s18 = sshll.u32 %s3001_s17, 4  ;;  %s2889_s19 = scalar_lea.vmem %s218_s15, 16384  ;;  %s231_s18 = int_to_ptr.vmem [resolvable:$true] %s230_s18 }
  0x12   : > { %p3111_p12 = pnand %p3596_p9, %p2768_p11  ;;  %p2890_p0 = scmp.ne.s32.totalorder %s218_s15, %s2889_s19 }
  0x13   : > { %p2897_p3 = scmp.lt.s32.totalorder %s218_s15, %s218_s15  ;;  %p2898_p4 = scmp.lt.s32.totalorder %s2889_s19, %s2889_s19 }
  0x14   : > { %p2880_p13 = pneg %p3111_p12 }
  0x15   : > { %p2899_p7 = por %p2898_p4, %p2897_p3 }
  0x16   : > { %p2892_p1 = pnand %p2890_p0, %p2880_p13 }
  0x18   : > { %p2893_p2 = pneg %p2892_p1 }
  0x1a   : > { %p2900_p8 = pnand %p2899_p7, %p2893_p2 }
  0x1c   : > { %2903 = shalt.err (!%p2900_p8)
}
  0x1d   : > { %s3002_s20 = smov 1024   ;;  %s3003_s21 = smov 64  }
  0x1e   : > { %2771 = dma.hbm_to_vmem [thread:$0]  (!%p3111_p12), %s3589_s1, 16384, %s218_s15, [#allocation4], %s3002_s20, %s3002_s20, %s3003_s21  }
  0x1f   : > { %s2915_s29 = scalar_lea.vmem %s231_s18, 256  ;;  %p2923_p9 = scmp.lt.s32.totalorder %s231_s18, %s231_s18 }
  0x20   : > { %p2916_p11 = scmp.ne.s32.totalorder %s231_s18, %s2915_s29  ;;  %p2924_p6 = scmp.lt.s32.totalorder %s2915_s29, %s2915_s29 }
  0x22   : > { %p2918_p0 = pnand %p2916_p11, %p2880_p13  ;;  %p2925_p3 = por %p2924_p6, %p2923_p9 }
  0x24   : > { %p2919_p1 = pneg %p2918_p0 }
  0x26   : > { %p2926_p2 = pnand %p2925_p3, %p2919_p1 }
  0x28   : > { %2929 = shalt.err (!%p2926_p2)
}
  0x29   : > { %s3004_s8 = smov 128   ;;  %s3005_s9 = smov 8  }
  0x2a   : > { %2774 = dma.hbm_to_vmem [thread:$0]  (!%p3111_p12), %s3590_s2, 256, %s231_s18, [#allocation7], %s3004_s8, %s3004_s8, %s3005_s9  }
  0x2b   : > { %265 = sbr.rel (%p3103_p10) target bundleno = 8703 (0x21ff), region = 48  ;;  %p3601_p4 = scmp.eq.s32.totalorder (!%p3103_p10), %s3075_s28, 0 }
  0x30   : > { %2973 = dma.done.wait (%p3601_p4), [#allocation4], 16384   ;;  %p3602_p13 = pmov %p3601_p4 }
  0x31   : > { %p3603_p6 = pmov %p3601_p4 }
  0x32   : > { %2975 = vsyncadd (%p3602_p13), [#allocation4], 4294950912 }
  0x33   : > { %2977 = dma.done.wait (%p3603_p6), [#allocation7], 256   ;;  %p3604_p9 = pmov %p3601_p4 }
  0x34   : > { %v3006_v0 = vmov 0.0   ;;  %v457_v1 = vld [vmem:[#allocation3 + $0x3c8] sm:$0xff]  ;;  %v456_v2 = vld [vmem:[#allocation3 + $0x3c0] sm:$0xff]  ;;  %p300_p10 = scmp.lt.s32.totalorder %s3075_s28, 1  ;;  %vm3007_vm0 = vmmov 0   ;;  %s3010_s16 = smov 32  }
  0x35   : > { %2979 = vsyncadd (%p3604_p9), [#allocation7], 4294967040  ;;  %528 = vmatprep.mubr.f32.mxu0 %v3006_v0  ;;  %599 = vmatprep.mubr.f32.mxu1 %v3006_v0  ;;  %v449_v3 = vld [vmem:[#allocation3 + $0x388] sm:$0xff]  ;;  %v448_v4 = vld [vmem:[#allocation3 + $0x380] sm:$0xff]  ;;  %vm757_vm4 = vcmask 261120   ;;  %vm1692_vm5 = vcmask 130048  }
  0x36   : > { %464 = vmatprep.subr.mxu0 %v457_v1  ;;  %v441_v5 = vld [vmem:[#allocation3 + $0x348] sm:$0xff]  ;;  %v440_v6 = vld [vmem:[#allocation3 + $0x340] sm:$0xff]  ;;  %s301_s13 = scalar_select %p300_p10, %s3075_s28, 1  ;;  %vm2355_vm6 = vcmask 392192   ;;  %vm2357_vm7 = vcmask 523264  }
  0x37   : > { %465 = vmatpush1.msra.mxu0 %v456_v2  ;;  %v433_v7 = vld [vmem:[#allocation3 + $0x308] sm:$0xff]  ;;  %v432_v8 = vld [vmem:[#allocation3 + $0x300] sm:$0xff]  ;;  %s3011_s9 = smov 16   ;;  %s3012_s14 = smov 48  }
  0x38   : > { %466 = vmatprep.subr.mxu0 %v449_v3  ;;  %v425_v9 = vld [vmem:[#allocation3 + $0x2c8] sm:$0xff]  ;;  %v424_v10 = vld [vmem:[#allocation3 + $0x2c0] sm:$0xff]  ;;  %s2464_s15 = sshll.u32 %s301_s13, 3  ;;  %v3157_v3 = vld [vmem:[%s3591_s3 + $0x18] sm:$0xff]  ;;  %s2485_s13 = sshll.u32 %s3075_s28, 7 }
  0x39   : > { %467 = vmatpush1.msra.mxu0 %v448_v4  ;;  %v417_v11 = vld [vmem:[#allocation3 + $0x288] sm:$0xff]  ;;  %v416_v12 = vld [vmem:[#allocation3 + $0x280] sm:$0xff]  ;;  %s303_s19 = scalar_lea.vmem %s3588_s0, %s2464_s15  ;;  %v3164_v4 = vld [vmem:[%s3591_s3 + $0x10] sm:$0xff]  ;;  %s3009_s15 = smov 64  }
  0x3a   : > { %468 = vmatprep.subr.mxu0 %v441_v5  ;;  %v409_v13 = vld [vmem:[#allocation3 + $0x248] sm:$0xff]  ;;  %v408_v14 = vld [vmem:[#allocation3 + $0x240] sm:$0xff]  ;;  %s3553_s21 = scalar_lea.hbm %s3595_s7, %s2485_s13  ;;  %s3013_s23 = smov [#allocation8]  }
  0x3b   : > { %469 = vmatpush1.msra.mxu0 %v440_v6  ;;  %v401_v15 = vld [vmem:[#allocation3 + $0x208] sm:$0xff]  ;;  %v400_v16 = vld [vmem:[#allocation3 + $0x200] sm:$0xff]  ;;  %s2934_s29 = sshll.u32 %s3013_s23, 4  ;;  %s2935_s29 = int_to_ptr.vmem [resolvable:$false] %s2934_s29 }
  0x3c   : > { %470 = vmatprep.subr.mxu0 %v433_v7  ;;  %v393_v17 = vld [vmem:[#allocation3 + $0x1c8] sm:$0xff]  ;;  %v392_v18 = vld [vmem:[#allocation3 + $0x1c0] sm:$0xff]  ;;  %s2936_s8 = scalar_lea.vmem %s2935_s29, 256 }
  0x3d   : > { %471 = vmatpush1.msra.mxu0 %v432_v8  ;;  %v385_v19 = vld [vmem:[#allocation3 + $0x188] sm:$0xff]  ;;  %v384_v20 = vld [vmem:[#allocation3 + $0x180] sm:$0xff]  ;;  %v328_v8 = vlaneseq }
  0x3e   : > { %472 = vmatprep.subr.mxu0 %v425_v9  ;;  %v377_v21 = vld [vmem:[#allocation3 + $0x148] sm:$0xff]  ;;  %v376_v22 = vld [vmem:[#allocation3 + $0x140] sm:$0xff] }
  0x3f   : > { %473 = vmatpush1.msra.mxu0 %v424_v10  ;;  %v369_v23 = vld [vmem:[#allocation3 + $0x108] sm:$0xff]  ;;  %v368_v24 = vld [vmem:[#allocation3 + $0x100] sm:$0xff]  ;;  %v329_v10 = vand.u32 127, %v328_v8  ;;  %v454_v8 = vld [vmem:[#allocation3 + $0x3b0] sm:$0xff] }
  0x40   : > { %474 = vmatprep.subr.mxu0 %v417_v11  ;;  %v361_v25 = vld [vmem:[#allocation3 + $0xc8] sm:$0xff]  ;;  %v360_v26 = vld [vmem:[#allocation3 + $0xc0] sm:$0xff] }
  0x41   : > { %475 = vmatpush1.msra.mxu0 %v416_v12  ;;  %v353_v27 = vld [vmem:[#allocation3 + $0x88] sm:$0xff]  ;;  %v352_v28 = vld [vmem:[#allocation3 + $0x80] sm:$0xff]  ;;  %vm330_vm1 = vcmp.lt.s32.totalorder %v329_v10, 64  ;;  %vm331_vm2 = vcmp.ge.s32.totalorder %v329_v10, 96  ;;  %v447_v10 = vld [vmem:[#allocation3 + $0x378] sm:$0xff] }
  0x42   : > { %476 = vmatprep.subr.mxu0 %v409_v13  ;;  %v345_v29 = vld [vmem:[#allocation3 + $0x48] sm:$0xff]  ;;  %v344_v30 = vld [vmem:[#allocation3 + $0x40] sm:$0xff]  ;;  %vm332_vm3 = vmor %vm330_vm1, %vm331_vm2 }
  0x43   : > { %477 = vmatpush1.msra.mxu0 %v408_v14  ;;  %v337_v31 = vld [vmem:[#allocation3 + $0x8] sm:$0xff]  ;;  %v336_v32 = vld [vmem:[#allocation3] sm:$0xff] }
  0x44   : > { %478 = vmatprep.subr.mxu0 %v401_v15  ;;  %v3150_v33 = vld [vmem:[%s303_s19] sm:$0xff]  ;;  %v461_v34 = vld [vmem:[#allocation3 + $0x3e8] sm:$0xff] }
  0x45   : > { %479 = vmatpush1.msra.mxu0 %v400_v16  ;;  %v460_v35 = vld [vmem:[#allocation3 + $0x3e0] sm:$0xff]  ;;  %v453_v36 = vld [vmem:[#allocation3 + $0x3a8] sm:$0xff]  ;;  %v3008_v16 = vmov 1.0  }
  0x46   : > { %480 = vmatprep.subr.mxu0 %v393_v17  ;;  %v452_v37 = vld [vmem:[#allocation3 + $0x3a0] sm:$0xff]  ;;  %v445_v38 = vld [vmem:[#allocation3 + $0x368] sm:$0xff]  ;;  %v3208_v17 = vsel %vm332_vm3, 0.5, %v3008_v16  ;;  %v438_v16 = vld [vmem:[#allocation3 + $0x330] sm:$0xff] }
  0x47   : > { %481 = vmatpush1.msra.mxu0 %v392_v18  ;;  %v444_v39 = vld [vmem:[#allocation3 + $0x360] sm:$0xff]  ;;  %v437_v40 = vld [vmem:[#allocation3 + $0x328] sm:$0xff] }
  0x48   : > { %482 = vmatprep.subr.mxu0 %v385_v19  ;;  %v436_v41 = vld [vmem:[#allocation3 + $0x320] sm:$0xff]  ;;  %v429_v42 = vld [vmem:[#allocation3 + $0x2e8] sm:$0xff] }
  0x49   : > { %483 = vmatpush1.msra.mxu0 %v384_v20  ;;  %v428_v43 = vld [vmem:[#allocation3 + $0x2e0] sm:$0xff]  ;;  %v421_v44 = vld [vmem:[#allocation3 + $0x2a8] sm:$0xff] }
  0x4a   : > { %484 = vmatprep.subr.mxu0 %v377_v21  ;;  %v420_v45 = vld [vmem:[#allocation3 + $0x2a0] sm:$0xff]  ;;  %v413_v46 = vld [vmem:[#allocation3 + $0x268] sm:$0xff] }
  0x4b   : > { %485 = vmatpush1.msra.mxu0 %v376_v22  ;;  %v412_v47 = vld [vmem:[#allocation3 + $0x260] sm:$0xff]  ;;  %v405_v48 = vld [vmem:[#allocation3 + $0x228] sm:$0xff]  ;;  %v3213_v22 = vsel %vm332_vm3, 0.5, %v3006_v0 }
  0x4c   : > { %486 = vmatprep.subr.mxu0 %v369_v23  ;;  %v404_v49 = vld [vmem:[#allocation3 + $0x220] sm:$0xff]  ;;  %v397_v50 = vld [vmem:[#allocation3 + $0x1e8] sm:$0xff] }
  0x4d   : > { %487 = vmatpush1.msra.mxu0 %v368_v24  ;;  %v396_v51 = vld [vmem:[#allocation3 + $0x1e0] sm:$0xff]  ;;  %v389_v52 = vld [vmem:[#allocation3 + $0x1a8] sm:$0xff] }
  0x4e   : > { %488 = vmatprep.subr.mxu0 %v361_v25  ;;  %v388_v53 = vld [vmem:[#allocation3 + $0x1a0] sm:$0xff]  ;;  %v381_v54 = vld [vmem:[#allocation3 + $0x168] sm:$0xff] }
  0x4f   : > { %489 = vmatpush1.msra.mxu0 %v360_v26  ;;  %v380_v55 = vld [vmem:[#allocation3 + $0x160] sm:$0xff]  ;;  %v373_v56 = vld [vmem:[#allocation3 + $0x128] sm:$0xff] }
  0x50   : > { %490 = vmatprep.subr.mxu0 %v353_v27  ;;  %v372_v57 = vld [vmem:[#allocation3 + $0x120] sm:$0xff]  ;;  %v365_v58 = vld [vmem:[#allocation3 + $0xe8] sm:$0xff] }
  0x51   : > { %491 = vmatpush1.msra.mxu0 %v352_v28  ;;  %v364_v59 = vld [vmem:[#allocation3 + $0xe0] sm:$0xff]  ;;  %v357_v60 = vld [vmem:[#allocation3 + $0xa8] sm:$0xff] }
  0x52   : > { %492 = vmatprep.subr.mxu0 %v345_v29  ;;  %v356_v61 = vld [vmem:[#allocation3 + $0xa0] sm:$0xff]  ;;  %v349_v62 = vld [vmem:[#allocation3 + $0x68] sm:$0xff] }
  0x53   : > { %493 = vmatpush1.msra.mxu0 %v344_v30  ;;  %v348_v63 = vld [vmem:[#allocation3 + $0x60] sm:$0xff]  ;;  %v341_v1 = vld [vmem:[#allocation3 + $0x28] sm:$0xff]  ;;  %v459_v30 = vld [vmem:[#allocation3 + $0x3d8] sm:$0xff] }
  0x54   : > { %494 = vmatprep.subr.mxu0 %v337_v31  ;;  %v340_v2 = vld [vmem:[#allocation3 + $0x20] sm:$0xff]  ;;  %v3173_v5 = vld [vmem:[%s3591_s3 + $0x8] sm:$0xff]  ;;  %v458_v31 = vld [vmem:[#allocation3 + $0x3d0] sm:$0xff]  ;;  %535 = vmatprep.subr.mxu1 %v459_v30 }
  0x55   : > { %495 = vmatpush1.msra.mxu0 %v336_v32  ;;  %v3180_v6 = vld [vmem:[%s3591_s3] sm:$0xff]  ;;  %v451_v32 = vld [vmem:[#allocation3 + $0x398] sm:$0xff]  ;;  %536 = vmatpush1.msra.mxu1 %v458_v31  ;;  %v398_v30 = vld [vmem:[#allocation3 + $0x1f0] sm:$0xff] }
  0x56   : > { %529 = vmatmul.mubr.f32.vlgmr.msra.gmra.mxu0 %v3150_v33  ;;  %606 = vmatprep.subr.mxu0 %v461_v34  ;;  %v3206_v13 = vld [vmem:[%s3592_s4] ss:$0 sm:$0xff]  ;;  %v450_v34 = vld [vmem:[#allocation3 + $0x390] sm:$0xff]  ;;  %v391_v31 = vld [vmem:[#allocation3 + $0x1b8] sm:$0xff] }
  0x57   : > { %607 = vmatpush1.msra.mxu0 %v460_v35  ;;  %670 = vmatprep.mubr.f32.mxu0 %v3006_v0  ;;  %v443_v35 = vld [vmem:[#allocation3 + $0x358] sm:$0xff] }
  0x58   : > { %608 = vmatprep.subr.mxu0 %v453_v36  ;;  %537 = vmatprep.subr.mxu1 %v451_v32  ;;  %v442_v36 = vld [vmem:[#allocation3 + $0x350] sm:$0xff] }
  0x59   : > { %609 = vmatpush1.msra.mxu0 %v452_v37  ;;  %538 = vmatpush1.msra.mxu1 %v450_v34  ;;  %v435_v37 = vld [vmem:[#allocation3 + $0x318] sm:$0xff]  ;;  %v390_v32 = vld [vmem:[#allocation3 + $0x1b0] sm:$0xff] }
  0x5a   : > { %610 = vmatprep.subr.mxu0 %v445_v38  ;;  %539 = vmatprep.subr.mxu1 %v443_v35  ;;  %v434_v38 = vld [vmem:[#allocation3 + $0x310] sm:$0xff]  ;;  %v383_v34 = vld [vmem:[#allocation3 + $0x178] sm:$0xff] }
  0x5b   : > { %611 = vmatpush1.msra.mxu0 %v444_v39  ;;  %540 = vmatpush1.msra.mxu1 %v442_v36  ;;  %v427_v39 = vld [vmem:[#allocation3 + $0x2d8] sm:$0xff]  ;;  %v382_v35 = vld [vmem:[#allocation3 + $0x170] sm:$0xff] }
  0x5c   : > { %612 = vmatprep.subr.mxu0 %v437_v40  ;;  %541 = vmatprep.subr.mxu1 %v435_v37  ;;  %v426_v40 = vld [vmem:[#allocation3 + $0x2d0] sm:$0xff]  ;;  %v375_v36 = vld [vmem:[#allocation3 + $0x138] sm:$0xff] }
  0x5d   : > { %613 = vmatpush1.msra.mxu0 %v436_v41  ;;  %542 = vmatpush1.msra.mxu1 %v434_v38  ;;  %v419_v41 = vld [vmem:[#allocation3 + $0x298] sm:$0xff]  ;;  %v374_v37 = vld [vmem:[#allocation3 + $0x130] sm:$0xff] }
  0x5e   : > { %614 = vmatprep.subr.mxu0 %v429_v42  ;;  %543 = vmatprep.subr.mxu1 %v427_v39  ;;  %v418_v42 = vld [vmem:[#allocation3 + $0x290] sm:$0xff]  ;;  %v367_v38 = vld [vmem:[#allocation3 + $0xf8] sm:$0xff] }
  0x5f   : > { %615 = vmatpush1.msra.mxu0 %v428_v43  ;;  %544 = vmatpush1.msra.mxu1 %v426_v40  ;;  %v366_v39 = vld [vmem:[#allocation3 + $0xf0] sm:$0xff]  ;;  %v359_v40 = vld [vmem:[#allocation3 + $0xb8] sm:$0xff] }
  0x60   : > { %616 = vmatprep.subr.mxu0 %v421_v44  ;;  %v411_v44 = vld [vmem:[#allocation3 + $0x258] sm:$0xff]  ;;  %545 = vmatprep.subr.mxu1 %v419_v41  ;;  %v358_v41 = vld [vmem:[#allocation3 + $0xb0] sm:$0xff] }
  0x61   : > { %617 = vmatpush1.msra.mxu0 %v420_v45  ;;  %v410_v45 = vld [vmem:[#allocation3 + $0x250] sm:$0xff]  ;;  %546 = vmatpush1.msra.mxu1 %v418_v42  ;;  %v351_v42 = vld [vmem:[#allocation3 + $0x78] sm:$0xff] }
  0x62   : > { %618 = vmatprep.subr.mxu0 %v413_v46  ;;  %v403_v46 = vld [vmem:[#allocation3 + $0x218] sm:$0xff]  ;;  %547 = vmatprep.subr.mxu1 %v411_v44 }
  0x63   : > { %619 = vmatpush1.msra.mxu0 %v412_v47  ;;  %v402_v47 = vld [vmem:[#allocation3 + $0x210] sm:$0xff]  ;;  %548 = vmatpush1.msra.mxu1 %v410_v45  ;;  %v343_v44 = vld [vmem:[#allocation3 + $0x38] sm:$0xff] }
  0x64   : > { %620 = vmatprep.subr.mxu0 %v405_v48  ;;  %v395_v48 = vld [vmem:[#allocation3 + $0x1d8] sm:$0xff]  ;;  %549 = vmatprep.subr.mxu1 %v403_v46  ;;  %v342_v45 = vld [vmem:[#allocation3 + $0x30] sm:$0xff] }
  0x65   : > { %621 = vmatpush1.msra.mxu0 %v404_v49  ;;  %v394_v49 = vld [vmem:[#allocation3 + $0x1d0] sm:$0xff]  ;;  %550 = vmatpush1.msra.mxu1 %v402_v47 }
  0x66   : > { %622 = vmatprep.subr.mxu0 %v397_v50  ;;  %v387_v50 = vld [vmem:[#allocation3 + $0x198] sm:$0xff]  ;;  %551 = vmatprep.subr.mxu1 %v395_v48 }
  0x67   : > { %623 = vmatpush1.msra.mxu0 %v396_v51  ;;  %v386_v51 = vld [vmem:[#allocation3 + $0x190] sm:$0xff]  ;;  %552 = vmatpush1.msra.mxu1 %v394_v49 }
  0x68   : > { %624 = vmatprep.subr.mxu0 %v389_v52  ;;  %v379_v52 = vld [vmem:[#allocation3 + $0x158] sm:$0xff]  ;;  %553 = vmatprep.subr.mxu1 %v387_v50 }
  0x69   : > { %625 = vmatpush1.msra.mxu0 %v388_v53  ;;  %v378_v53 = vld [vmem:[#allocation3 + $0x150] sm:$0xff]  ;;  %554 = vmatpush1.msra.mxu1 %v386_v51 }
  0x6a   : > { %626 = vmatprep.subr.mxu0 %v381_v54  ;;  %v371_v54 = vld [vmem:[#allocation3 + $0x118] sm:$0xff]  ;;  %555 = vmatprep.subr.mxu1 %v379_v52 }
  0x6b   : > { %627 = vmatpush1.msra.mxu0 %v380_v55  ;;  %v370_v55 = vld [vmem:[#allocation3 + $0x110] sm:$0xff]  ;;  %556 = vmatpush1.msra.mxu1 %v378_v53 }
  0x6c   : > { %628 = vmatprep.subr.mxu0 %v373_v56  ;;  %v363_v56 = vld [vmem:[#allocation3 + $0xd8] sm:$0xff]  ;;  %557 = vmatprep.subr.mxu1 %v371_v54 }
  0x6d   : > { %629 = vmatpush1.msra.mxu0 %v372_v57  ;;  %v362_v57 = vld [vmem:[#allocation3 + $0xd0] sm:$0xff]  ;;  %558 = vmatpush1.msra.mxu1 %v370_v55 }
  0x6e   : > { %630 = vmatprep.subr.mxu0 %v365_v58  ;;  %v355_v58 = vld [vmem:[#allocation3 + $0x98] sm:$0xff]  ;;  %559 = vmatprep.subr.mxu1 %v363_v56 }
  0x6f   : > { %631 = vmatpush1.msra.mxu0 %v364_v59  ;;  %v354_v59 = vld [vmem:[#allocation3 + $0x90] sm:$0xff]  ;;  %560 = vmatpush1.msra.mxu1 %v362_v57 }
  0x70   : > { %632 = vmatprep.subr.mxu0 %v357_v60  ;;  %v347_v60 = vld [vmem:[#allocation3 + $0x58] sm:$0xff]  ;;  %561 = vmatprep.subr.mxu1 %v355_v58 }
  0x71   : > { %633 = vmatpush1.msra.mxu0 %v356_v61  ;;  %v346_v61 = vld [vmem:[#allocation3 + $0x50] sm:$0xff]  ;;  %562 = vmatpush1.msra.mxu1 %v354_v59 }
  0x72   : > { %634 = vmatprep.subr.mxu0 %v349_v62  ;;  %v339_v62 = vld [vmem:[#allocation3 + $0x18] sm:$0xff]  ;;  %563 = vmatprep.subr.mxu1 %v347_v60 }
  0x73   : > { %635 = vmatpush1.msra.mxu0 %v348_v63  ;;  %v338_v63 = vld [vmem:[#allocation3 + $0x10] sm:$0xff]  ;;  %564 = vmatpush1.msra.mxu1 %v346_v61 }
  0x74   : > { %636 = vmatprep.subr.mxu0 %v341_v1  ;;  %v463_v1 = vld [vmem:[#allocation3 + $0x3f8] sm:$0xff]  ;;  %565 = vmatprep.subr.mxu1 %v339_v62 }
  0x75   : > { %637 = vmatpush1.msra.mxu0 %v340_v2  ;;  %v462_v2 = vld [vmem:[#allocation3 + $0x3f0] sm:$0xff]  ;;  %566 = vmatpush1.msra.mxu1 %v338_v63 }
  0x76   : > { %671 = vmatmul.mubr.f32.vlgmr.msra.gmra.mxu0 %v3150_v33  ;;  %2572 = vmatprep.subr.mxu0 %v3006_v0 }
  0x77   : > { %2573 = vmatpush3.msra.mxu0 %v3157_v3  ;;  %2580 = vmatprep.mubr.msk.f32.mxu0 %vm3007_vm0, %v3006_v0 }
  0x78   : > { %2574 = vmatprep.subr.mxu0 %v3006_v0  ;;  %600 = vmatmul.mubr.f32.vlgmr.msra.gmra.mxu1 %v3150_v33 }
  0x79   : > { %2575 = vmatpush3.msra.mxu0 %v3164_v4  ;;  %677 = vmatprep.subr.mxu1 %v463_v1 }
  0x7a   : > { %2576 = vmatprep.subr.mxu0 %v3006_v0  ;;  %678 = vmatpush1.msra.mxu1 %v462_v2 }
  0x7b   : > { %2577 = vmatpush3.msra.mxu0 %v3173_v5  ;;  %741 = vmatprep.mubr.f32.mxu1 %v3006_v0 }
  0x7c   : > { %2578 = vmatprep.subr.mxu0 %v3006_v0 }
  0x7d   : > { %2579 = vmatpush3.msra.mxu0 %v3180_v6 }
  0x7e   : > { %2581 = vmatmul.mubr.f32.vlgmr.msra.gmra.mxu0 %v3006_v0  ;;  %2594 = vmatprep.subr.mxu0 %v3006_v0 }
  0x7f   : > { %2595 = vmatpush3.msra.mxu0 %v3157_v3  ;;  %2602 = vmatprep.mubr.msk.f32.mxu0 %vm3007_vm0, %v3006_v0 }
  0x80   : > { %2596 = vmatprep.subr.mxu0 %v3006_v0 }
  0x81   : > { %2597 = vmatpush3.msra.mxu0 %v3164_v4 }
  0x82   : > { %2598 = vmatprep.subr.mxu0 %v3006_v0 }
  0x83   : > { %2599 = vmatpush3.msra.mxu0 %v3173_v5 }
  0x84   : > { %2600 = vmatprep.subr.mxu0 %v3006_v0 }
  0x85   : > { %2601 = vmatpush3.msra.mxu0 %v3180_v6 }
  0x86   : > { %2616 = vmatprep.subr.mxu0 %v3006_v0 }
 0x116   : > { %v530_v7 = vpop.f32.mrf.mxu0 }
 0x118   : > { %v3197_v9 = vpop.f32.mrf.mxu0 }
 0x136   : > { %v3199_v11 = vpop.f32.mrf.mxu0 }
 0x138   : > { %v3201_v12 = vpop.f32.mrf.mxu0 }
 0x13e   : > { %v827_v14 = vpop.f32.mrf.mxu0 }
 0x13f   : > { %v831_v15 = vadd.f32 %v827_v14, %v530_v7  ;;  %v455_v7 = vld [vmem:[#allocation3 + $0x3b8] sm:$0xff]  ;;  %v446_v14 = vld [vmem:[#allocation3 + $0x370] sm:$0xff] }
 0x140   : > { %v2582_v18 = vpop.f32.mrf.mxu0  ;;  %679 = vmatprep.subr.mxu1 %v455_v7 }
 0x141   : > { %v832_v19 = vadd.f32 %v3206_v13, %v831_v15  ;;  %680 = vmatpush1.msra.mxu1 %v454_v8  ;;  %v439_v15 = vld [vmem:[#allocation3 + $0x338] sm:$0xff] }
 0x142   : > { %681 = vmatprep.subr.mxu1 %v447_v10  ;;  %v431_v18 = vld [vmem:[#allocation3 + $0x2f8] sm:$0xff] }
 0x143   : > { %v833_v20 = vmul.f32 %v832_v19, %v3208_v17  ;;  %682 = vmatpush1.msra.mxu1 %v446_v14  ;;  %v430_v19 = vld [vmem:[#allocation3 + $0x2f0] sm:$0xff] }
 0x144   : > { %683 = vmatprep.subr.mxu1 %v439_v15 }
 0x145   : > { %2829 = vtanh.f32 %v833_v20  ;;  %684 = vmatpush1.msra.mxu1 %v438_v16  ;;  %v423_v20 = vld [vmem:[#allocation3 + $0x2b8] sm:$0xff] }
 0x146   : > { %685 = vmatprep.subr.mxu1 %v431_v18 }
 0x147   : > { %686 = vmatpush1.msra.mxu1 %v430_v19 }
 0x148   : > { %687 = vmatprep.subr.mxu1 %v423_v20 }
 0x152   : > { %v2830_v21 = vpop.eup %2829 }
 0x153   : > { %v835_v23 = vmul.f32 %v2830_v21, %v3208_v17  ;;  %v422_v21 = vld [vmem:[#allocation3 + $0x2b0] sm:$0xff] }
 0x154   : > { %688 = vmatpush1.msra.mxu1 %v422_v21 }
 0x155   : > { %v3217_v24 = vadd.f32 %v835_v23, %v3213_v22  ;;  %v415_v23 = vld [vmem:[#allocation3 + $0x278] sm:$0xff] }
 0x156   : > { %689 = vmatprep.subr.mxu1 %v415_v23 }
 0x157   : > { %839 = vrot.lane.b32.xlu0 %v3217_v24, %s3009_s15  ;;  %v837_v27 = vmul.f32 0.0, %v3217_v24 }
 0x1c9   : > { %v840_v25 = vpop.permute.xlu0 %839 }
 0x1ca   : > { %v842_v26 = vmul.f32 %v840_v25, %v3217_v24  ;;  %v414_v25 = vld [vmem:[#allocation3 + $0x270] sm:$0xff] }
 0x1cb   : > { %690 = vmatpush1.msra.mxu1 %v414_v25 }
 0x1cc   : > { %844 = vrot.lane.b32.xlu0 %v842_v26, %s3010_s16  ;;  %v407_v26 = vld [vmem:[#allocation3 + $0x238] sm:$0xff] }
 0x1cd   : > { %691 = vmatprep.subr.mxu1 %v407_v26 }
 0x23e   : > { %v845_v28 = vpop.permute.xlu0 %844 }
 0x23f   : > { %v3224_v29 = vadd.f32 %v845_v28, %v837_v27  ;;  %v406_v27 = vld [vmem:[#allocation3 + $0x230] sm:$0xff]  ;;  %v399_v28 = vld [vmem:[#allocation3 + $0x1f8] sm:$0xff] }
 0x240   : > { %692 = vmatpush1.msra.mxu1 %v406_v27 }
 0x241   : > { %2831 = vtanh.f32 %v3224_v29  ;;  %693 = vmatprep.subr.mxu1 %v399_v28 }
 0x242   : > { %694 = vmatpush1.msra.mxu1 %v398_v30 }
 0x243   : > { %695 = vmatprep.subr.mxu1 %v391_v31 }
 0x244   : > { %696 = vmatpush1.msra.mxu1 %v390_v32 }
 0x245   : > { %697 = vmatprep.subr.mxu1 %v383_v34 }
 0x246   : > { %698 = vmatpush1.msra.mxu1 %v382_v35 }
 0x247   : > { %699 = vmatprep.subr.mxu1 %v375_v36 }
 0x248   : > { %700 = vmatpush1.msra.mxu1 %v374_v37 }
 0x249   : > { %701 = vmatprep.subr.mxu1 %v367_v38 }
 0x24a   : > { %702 = vmatpush1.msra.mxu1 %v366_v39 }
 0x24b   : > { %703 = vmatprep.subr.mxu1 %v359_v40 }
 0x24c   : > { %704 = vmatpush1.msra.mxu1 %v358_v41 }
 0x24d   : > { %705 = vmatprep.subr.mxu1 %v351_v42 }
 0x24e   : > { %v2832_v43 = vpop.eup %2831 }
 0x24f   : > { %850 = vrot.lane.b32.xlu1 %v2832_v43, %s3009_s15  ;;  %v350_v43 = vld [vmem:[#allocation3 + $0x70] sm:$0xff] }
 0x250   : > { %706 = vmatpush1.msra.mxu1 %v350_v43 }
 0x251   : > { %707 = vmatprep.subr.mxu1 %v343_v44 }
 0x252   : > { %708 = vmatpush1.msra.mxu1 %v342_v45 }
 0x253   : > { %742 = vmatmul.mubr.f32.vlgmr.msra.gmra.mxu1 %v3150_v33  ;;  %2583 = vmatprep.subr.mxu1 %v3006_v0 }
 0x254   : > { %2584 = vmatpush3.msra.mxu1 %v3157_v3  ;;  %2591 = vmatprep.mubr.msk.f32.mxu1 %vm3007_vm0, %v3006_v0 }
 0x255   : > { %2585 = vmatprep.subr.mxu1 %v3006_v0 }
 0x256   : > { %2586 = vmatpush3.msra.mxu1 %v3164_v4 }
 0x257   : > { %2587 = vmatprep.subr.mxu1 %v3006_v0 }
 0x258   : > { %2588 = vmatpush3.msra.mxu1 %v3173_v5 }
 0x259   : > { %2589 = vmatprep.subr.mxu1 %v3006_v0 }
 0x25a   : > { %2590 = vmatpush3.msra.mxu1 %v3180_v6 }
 0x25b   : > { %2605 = vmatprep.subr.mxu1 %v3006_v0 }
 0x2c1   : > { %v851_v33 = vpop.permute.xlu1 %850 }
 0x2c2   : > { %v853_v46 = vmul.f32 %v851_v33, %v3217_v24  ;;  %v601_v24 = vpop.f32.mrf.mxu1 }
 0x2c4   : > { %856 = vrot.lane.b32.xlu1 %v853_v46, %s3010_s16  ;;  %v3255_v48 = vpop.f32.mrf.mxu1 }
 0x313   : > { %v3257_v49 = vpop.f32.mrf.mxu1 }
 0x315   : > { %v3259_v50 = vpop.f32.mrf.mxu1 }
 0x336   : > { %v857_v47 = vpop.permute.xlu1 %856 }
 0x337   : > { %2592 = vmatmul.mubr.msk.f32.vlgmr.msra.gmra.mxu1 %vm757_vm4, %v857_v47 }
 0x338   : > { %2606 = vmatpush3.msra.mxu1 %v3157_v3  ;;  %2613 = vmatprep.mubr.msk.f32.mxu1 %vm3007_vm0, %v3006_v0 }
 0x339   : > { %2607 = vmatprep.subr.mxu1 %v3006_v0 }
 0x33a   : > { %2608 = vmatpush3.msra.mxu1 %v3164_v4 }
 0x33b   : > { %2609 = vmatprep.subr.mxu1 %v3006_v0 }
 0x33c   : > { %2610 = vmatpush3.msra.mxu1 %v3173_v5 }
 0x33d   : > { %2611 = vmatprep.subr.mxu1 %v3006_v0 }
 0x33e   : > { %2612 = vmatpush3.msra.mxu1 %v3180_v6 }
 0x33f   : > { %2627 = vmatprep.subr.mxu1 %v3006_v0 }
 0x3f7   : > { %v926_v51 = vpop.f32.mrf.mxu1 }
 0x3f8   : > { %v930_v52 = vadd.f32 %v926_v51, %v3197_v9 }
 0x3f9   : > { %v2593_v53 = vpop.f32.mrf.mxu1 }
 0x3fa   : > { %v931_v54 = vadd.f32 %v3206_v13, %v930_v52 }
 0x3fc   : > { %v932_v55 = vmul.f32 %v931_v54, %v3208_v17 }
 0x3fe   : > { %2833 = vtanh.f32 %v932_v55 }
 0x40b   : > { %v2834_v56 = vpop.eup %2833 }
 0x40c   : > { %v934_v57 = vmul.f32 %v2834_v56, %v3208_v17 }
 0x40e   : > { %v935_v58 = vadd.f32 %v934_v57, %v3213_v22 }
 0x410   : > { %938 = vrot.lane.b32.xlu0 %v935_v58, %s3009_s15  ;;  %v936_v61 = vmul.f32 %v935_v58, %v3224_v29 }
 0x482   : > { %v939_v59 = vpop.permute.xlu0 %938 }
 0x483   : > { %v941_v60 = vmul.f32 %v939_v59, %v935_v58 }
 0x485   : > { %943 = vrot.lane.b32.xlu1 %v941_v60, %s3010_s16 }
 0x4f7   : > { %v944_v9 = vpop.permute.xlu1 %943 }
 0x4f8   : > { %v946_v62 = vadd.f32 %v944_v9, %v936_v61 }
 0x4fa   : > { %2835 = vtanh.f32 %v946_v62 }
 0x507   : > { %v2836_v63 = vpop.eup %2835 }
 0x508   : > { %949 = vrot.lane.b32.xlu0 %v2836_v63, %s3009_s15 }
 0x57a   : > { %v950_v1 = vpop.permute.xlu0 %949 }
 0x57b   : > { %v952_v2 = vmul.f32 %v950_v1, %v935_v58 }
 0x57d   : > { %955 = vrot.lane.b32.xlu1 %v952_v2, %s3010_s16 }
 0x5ef   : > { %v956_v7 = vpop.permute.xlu1 %955 }
 0x5f0   : > { %2603 = vmatmul.mubr.msk.f32.vlgmr.msra.gmra.mxu0 %vm757_vm4, %v956_v7 }
 0x5f1   : > { %2617 = vmatpush3.msra.mxu0 %v3157_v3  ;;  %2624 = vmatprep.mubr.msk.f32.mxu0 %vm3007_vm0, %v3006_v0 }
 0x5f2   : > { %2618 = vmatprep.subr.mxu0 %v3006_v0 }
 0x5f3   : > { %2619 = vmatpush3.msra.mxu0 %v3164_v4 }
 0x5f4   : > { %2620 = vmatprep.subr.mxu0 %v3006_v0 }
 0x5f5   : > { %2621 = vmatpush3.msra.mxu0 %v3173_v5 }
 0x5f6   : > { %2622 = vmatprep.subr.mxu0 %v3006_v0 }
 0x5f7   : > { %2623 = vmatpush3.msra.mxu0 %v3180_v6 }
 0x5f8   : > { %2638 = vmatprep.subr.mxu0 %v3006_v0 }
 0x6b0   : > { %v1025_v29 = vpop.f32.mrf.mxu0 }
 0x6b1   : > { %v1029_v8 = vadd.f32 %v1025_v29, %v601_v24 }
 0x6b2   : > { %v2604_v10 = vpop.f32.mrf.mxu0 }
 0x6b3   : > { %v1030_v14 = vadd.f32 %v3206_v13, %v1029_v8 }
 0x6b5   : > { %v1031_v15 = vmul.f32 %v1030_v14, %v3208_v17 }
 0x6b7   : > { %2837 = vtanh.f32 %v1031_v15 }
 0x6c4   : > { %v2838_v16 = vpop.eup %2837 }
 0x6c5   : > { %v1033_v18 = vmul.f32 %v2838_v16, %v3208_v17 }
 0x6c7   : > { %v1034_v19 = vadd.f32 %v1033_v18, %v3213_v22 }
 0x6c9   : > { %1037 = vrot.lane.b32.xlu0 %v1034_v19, %s3009_s15  ;;  %v1035_v23 = vmul.f32 %v1034_v19, %v946_v62 }
 0x73b   : > { %v1038_v20 = vpop.permute.xlu0 %1037 }
 0x73c   : > { %v1040_v21 = vmul.f32 %v1038_v20, %v1034_v19 }
 0x73e   : > { %1042 = vrot.lane.b32.xlu1 %v1040_v21, %s3010_s16 }
 0x7b0   : > { %v1043_v25 = vpop.permute.xlu1 %1042 }
 0x7b1   : > { %v1045_v26 = vadd.f32 %v1043_v25, %v1035_v23 }
 0x7b3   : > { %2839 = vtanh.f32 %v1045_v26 }
 0x7c0   : > { %v2840_v27 = vpop.eup %2839 }
 0x7c1   : > { %1048 = vrot.lane.b32.xlu0 %v2840_v27, %s3009_s15 }
 0x833   : > { %v1049_v28 = vpop.permute.xlu0 %1048 }
 0x834   : > { %v1051_v30 = vmul.f32 %v1049_v28, %v1034_v19 }
 0x836   : > { %1054 = vrot.lane.b32.xlu1 %v1051_v30, %s3010_s16 }
 0x8a8   : > { %v1055_v31 = vpop.permute.xlu1 %1054 }
 0x8a9   : > { %2614 = vmatmul.mubr.msk.f32.vlgmr.msra.gmra.mxu1 %vm757_vm4, %v1055_v31 }
 0x8aa   : > { %2628 = vmatpush3.msra.mxu1 %v3157_v3  ;;  %2635 = vmatprep.mubr.msk.f32.mxu1 %vm3007_vm0, %v3006_v0 }
 0x8ab   : > { %2629 = vmatprep.subr.mxu1 %v3006_v0 }
 0x8ac   : > { %2630 = vmatpush3.msra.mxu1 %v3164_v4 }
 0x8ad   : > { %2631 = vmatprep.subr.mxu1 %v3006_v0 }
 0x8ae   : > { %2632 = vmatpush3.msra.mxu1 %v3173_v5 }
 0x8af   : > { %2633 = vmatprep.subr.mxu1 %v3006_v0 }
 0x8b0   : > { %2634 = vmatpush3.msra.mxu1 %v3180_v6 }
 0x8b1   : > { %2649 = vmatprep.subr.mxu1 %v3006_v0 }
 0x969   : > { %v1124_v32 = vpop.f32.mrf.mxu1 }
 0x96a   : > { %v1128_v34 = vadd.f32 %v1124_v32, %v3255_v48 }
 0x96b   : > { %v2615_v35 = vpop.f32.mrf.mxu1 }
 0x96c   : > { %v1129_v36 = vadd.f32 %v3206_v13, %v1128_v34 }
 0x96e   : > { %v1130_v37 = vmul.f32 %v1129_v36, %v3208_v17 }
 0x970   : > { %2841 = vtanh.f32 %v1130_v37 }
 0x97d   : > { %v2842_v38 = vpop.eup %2841 }
 0x97e   : > { %v1132_v39 = vmul.f32 %v2842_v38, %v3208_v17 }
 0x980   : > { %v1133_v40 = vadd.f32 %v1132_v39, %v3213_v22 }
 0x982   : > { %1136 = vrot.lane.b32.xlu0 %v1133_v40, %s3009_s15  ;;  %v1134_v43 = vmul.f32 %v1133_v40, %v1045_v26 }
 0x9f4   : > { %v1137_v41 = vpop.permute.xlu0 %1136 }
 0x9f5   : > { %v1139_v42 = vmul.f32 %v1137_v41, %v1133_v40 }
 0x9f7   : > { %1141 = vrot.lane.b32.xlu1 %v1139_v42, %s3010_s16 }
 0xa69   : > { %v1142_v44 = vpop.permute.xlu1 %1141 }
 0xa6a   : > { %v1144_v45 = vadd.f32 %v1142_v44, %v1134_v43 }
 0xa6c   : > { %2843 = vtanh.f32 %v1144_v45 }
 0xa79   : > { %v2844_v33 = vpop.eup %2843 }
 0xa7a   : > { %1147 = vrot.lane.b32.xlu0 %v2844_v33, %s3009_s15 }
 0xaec   : > { %v1148_v46 = vpop.permute.xlu0 %1147 }
 0xaed   : > { %v1150_v47 = vmul.f32 %v1148_v46, %v1133_v40 }
 0xaef   : > { %1153 = vrot.lane.b32.xlu1 %v1150_v47, %s3010_s16 }
 0xb61   : > { %v1154_v24 = vpop.permute.xlu1 %1153 }
 0xb62   : > { %2625 = vmatmul.mubr.msk.f32.vlgmr.msra.gmra.mxu0 %vm757_vm4, %v1154_v24 }
 0xb63   : > { %2639 = vmatpush3.msra.mxu0 %v3157_v3  ;;  %2646 = vmatprep.mubr.msk.f32.mxu0 %vm3007_vm0, %v3006_v0 }
 0xb64   : > { %2640 = vmatprep.subr.mxu0 %v3006_v0 }
 0xb65   : > { %2641 = vmatpush3.msra.mxu0 %v3164_v4 }
 0xb66   : > { %2642 = vmatprep.subr.mxu0 %v3006_v0 }
 0xb67   : > { %2643 = vmatpush3.msra.mxu0 %v3173_v5 }
 0xb68   : > { %2644 = vmatprep.subr.mxu0 %v3006_v0 }
 0xb69   : > { %2645 = vmatpush3.msra.mxu0 %v3180_v6 }
 0xb6a   : > { %2660 = vmatprep.subr.mxu0 %v3006_v0 }
 0xc22   : > { %v1223_v48 = vpop.f32.mrf.mxu0 }
 0xc23   : > { %v1227_v51 = vadd.f32 %v1223_v48, %v3199_v11 }
 0xc24   : > { %v2626_v52 = vpop.f32.mrf.mxu0 }
 0xc25   : > { %v1228_v53 = vadd.f32 %v3206_v13, %v1227_v51 }
 0xc27   : > { %v1229_v54 = vmul.f32 %v1228_v53, %v3208_v17 }
 0xc29   : > { %2845 = vtanh.f32 %v1229_v54 }
 0xc36   : > { %v2846_v55 = vpop.eup %2845 }
 0xc37   : > { %v1231_v56 = vmul.f32 %v2846_v55, %v3208_v17 }
 0xc39   : > { %v1232_v57 = vadd.f32 %v1231_v56, %v3213_v22 }
 0xc3b   : > { %1235 = vrot.lane.b32.xlu0 %v1232_v57, %s3009_s15  ;;  %v1233_v60 = vmul.f32 %v1232_v57, %v1144_v45 }
 0xcad   : > { %v1236_v58 = vpop.permute.xlu0 %1235 }
 0xcae   : > { %v1238_v59 = vmul.f32 %v1236_v58, %v1232_v57  ;;  %v3386_v58 = vld [vmem:[%s3593_s5 + $0x18] sm:$0xff] }
 0xcb0   : > { %1240 = vrot.lane.b32.xlu1 %v1238_v59, %s3010_s16  ;;  %v3391_v59 = vld [vmem:[%s3593_s5 + $0x10] sm:$0xff] }
 0xd22   : > { %v1241_v61 = vpop.permute.xlu1 %1240 }
 0xd23   : > { %v1243_v11 = vadd.f32 %v1241_v61, %v1233_v60  ;;  %v3398_v60 = vld [vmem:[%s3593_s5 + $0x8] sm:$0xff]  ;;  %v3405_v61 = vld [vmem:[%s3593_s5] sm:$0xff] }
 0xd25   : > { %2847 = vtanh.f32 %v1243_v11 }
 0xd32   : > { %v2848_v9 = vpop.eup %2847 }
 0xd33   : > { %1246 = vrot.lane.b32.xlu0 %v2848_v9, %s3009_s15 }
 0xda5   : > { %v1247_v62 = vpop.permute.xlu0 %1246 }
 0xda6   : > { %v1249_v63 = vmul.f32 %v1247_v62, %v1232_v57 }
 0xda8   : > { %1252 = vrot.lane.b32.xlu1 %v1249_v63, %s3010_s16  ;;  %v3413_v63 = vld [vmem:[#allocation6 + $0x8] sm:$0xff] }
 0xe1a   : > { %v1253_v1 = vpop.permute.xlu1 %1252 }
 0xe1b   : > { %2636 = vmatmul.mubr.msk.f32.vlgmr.msra.gmra.mxu1 %vm757_vm4, %v1253_v1 }
 0xe1c   : > { %2650 = vmatpush3.msra.mxu1 %v3157_v3  ;;  %2657 = vmatprep.mubr.msk.f32.mxu1 %vm3007_vm0, %v3006_v0 }
 0xe1d   : > { %2651 = vmatprep.subr.mxu1 %v3006_v0 }
 0xe1e   : > { %2652 = vmatpush3.msra.mxu1 %v3164_v4 }
 0xe1f   : > { %2653 = vmatprep.subr.mxu1 %v3006_v0 }
 0xe20   : > { %2654 = vmatpush3.msra.mxu1 %v3173_v5 }
 0xe21   : > { %2655 = vmatprep.subr.mxu1 %v3006_v0 }
 0xe22   : > { %2656 = vmatpush3.msra.mxu1 %v3180_v6 }
 0xe23   : > { %2671 = vmatprep.subr.mxu1 %v3006_v0 }
 0xedb   : > { %v1322_v2 = vpop.f32.mrf.mxu1 }
 0xedc   : > { %v1326_v7 = vadd.f32 %v1322_v2, %v3201_v12  ;;  %v3431_v2 = vld [vmem:[#allocation6] sm:$0xff] }
 0xedd   : > { %v2637_v29 = vpop.f32.mrf.mxu1 }
 0xede   : > { %v1327_v8 = vadd.f32 %v3206_v13, %v1326_v7  ;;  %v3438_v7 = vld [vmem:[%s3594_s6] ss:$0 sm:$0xff] }
 0xee0   : > { %v1328_v10 = vmul.f32 %v1327_v8, %v3208_v17 }
 0xee2   : > { %2849 = vtanh.f32 %v1328_v10 }
 0xeef   : > { %v2850_v14 = vpop.eup %2849 }
 0xef0   : > { %v1330_v15 = vmul.f32 %v2850_v14, %v3208_v17 }
 0xef2   : > { %v1331_v16 = vadd.f32 %v1330_v15, %v3213_v22 }
 0xef4   : > { %1334 = vrot.lane.b32.xlu0 %v1331_v16, %s3009_s15  ;;  %v1332_v20 = vmul.f32 %v1331_v16, %v1243_v11 }
 0xf66   : > { %v1335_v18 = vpop.permute.xlu0 %1334 }
 0xf67   : > { %v1337_v19 = vmul.f32 %v1335_v18, %v1331_v16 }
 0xf69   : > { %1339 = vrot.lane.b32.xlu1 %v1337_v19, %s3010_s16 }
 0xfdb   : > { %v1340_v21 = vpop.permute.xlu1 %1339 }
 0xfdc   : > { %v1342_v12 = vadd.f32 %v1340_v21, %v1332_v20 }
 0xfde   : > { %2851 = vtanh.f32 %v1342_v12 }
 0xfeb   : > { %v2852_v23 = vpop.eup %2851 }
 0xfec   : > { %1345 = vrot.lane.b32.xlu0 %v2852_v23, %s3009_s15 }
0x105e   : > { %v1346_v25 = vpop.permute.xlu0 %1345 }
0x105f   : > { %v1348_v26 = vmul.f32 %v1346_v25, %v1331_v16 }
0x1061   : > { %1351 = vrot.lane.b32.xlu1 %v1348_v26, %s3010_s16 }
0x10d3   : > { %v1352_v27 = vpop.permute.xlu1 %1351 }
0x10d4   : > { %2647 = vmatmul.mubr.msk.f32.vlgmr.msra.gmra.mxu0 %vm757_vm4, %v1352_v27 }
0x10d5   : > { %2668 = vmatprep.mubr.msk.f32.mxu0 %vm3007_vm0, %v3006_v0  ;;  %2661 = vmatpush3.msra.mxu0 %v3386_v58 }
0x10d6   : > { %2662 = vmatprep.subr.mxu0 %v3006_v0 }
0x10d7   : > { %2663 = vmatpush3.msra.mxu0 %v3391_v59 }
0x10d8   : > { %2664 = vmatprep.subr.mxu0 %v3006_v0 }
0x10d9   : > { %2665 = vmatpush3.msra.mxu0 %v3398_v60 }
0x10da   : > { %2666 = vmatprep.subr.mxu0 %v3006_v0 }
0x10db   : > { %2667 = vmatpush3.msra.mxu0 %v3405_v61 }
0x10dc   : > { %2682 = vmatprep.subr.mxu0 %v3006_v0 }
0x1194   : > { %v1421_v28 = vpop.f32.mrf.mxu0 }
0x1195   : > { %v1425_v30 = vadd.f32 %v1421_v28, %v3257_v49 }
0x1196   : > { %v2648_v31 = vpop.f32.mrf.mxu0 }
0x1197   : > { %v1426_v32 = vadd.f32 %v3206_v13, %v1425_v30 }
0x1199   : > { %v1427_v34 = vmul.f32 %v1426_v32, %v3208_v17 }
0x119b   : > { %2853 = vtanh.f32 %v1427_v34 }
0x11a8   : > { %v2854_v35 = vpop.eup %2853 }
0x11a9   : > { %v1429_v36 = vmul.f32 %v2854_v35, %v3208_v17 }
0x11ab   : > { %v1430_v37 = vadd.f32 %v1429_v36, %v3213_v22 }
0x11ad   : > { %1433 = vrot.lane.b32.xlu0 %v1430_v37, %s3009_s15  ;;  %v1431_v40 = vmul.f32 %v1430_v37, %v1342_v12 }
0x121f   : > { %v1434_v38 = vpop.permute.xlu0 %1433 }
0x1220   : > { %v1436_v39 = vmul.f32 %v1434_v38, %v1430_v37  ;;  %v2873_v38 = vld [vmem:[%s3591_s3 + $0x18] sm:$0xff] }
0x1222   : > { %1438 = vrot.lane.b32.xlu1 %v1436_v39, %s3010_s16  ;;  %v2874_v39 = vld [vmem:[%s3591_s3 + $0x10] sm:$0xff] }
0x1294   : > { %v1439_v41 = vpop.permute.xlu1 %1438 }
0x1295   : > { %v1441_v49 = vadd.f32 %v1439_v41, %v1431_v40  ;;  %v2875_v40 = vld [vmem:[%s3591_s3 + $0x8] sm:$0xff]  ;;  %v2876_v41 = vld [vmem:[%s3591_s3] sm:$0xff] }
0x1297   : > { %2855 = vtanh.f32 %v1441_v49 }
0x12a4   : > { %v2856_v42 = vpop.eup %2855 }
0x12a5   : > { %1444 = vrot.lane.b32.xlu0 %v2856_v42, %s3009_s15 }
0x1317   : > { %v1445_v43 = vpop.permute.xlu0 %1444 }
0x1318   : > { %v1447_v44 = vmul.f32 %v1445_v43, %v1430_v37 }
0x131a   : > { %1450 = vrot.lane.b32.xlu1 %v1447_v44, %s3010_s16 }
0x138c   : > { %v1451_v45 = vpop.permute.xlu1 %1450 }
0x138d   : > { %2658 = vmatmul.mubr.msk.f32.vlgmr.msra.gmra.mxu1 %vm757_vm4, %v1451_v45 }
0x138e   : > { %2672 = vmatpush3.msra.mxu1 %v3157_v3  ;;  %2679 = vmatprep.mubr.msk.f32.mxu1 %vm3007_vm0, %v3006_v0 }
0x138f   : > { %2673 = vmatprep.subr.mxu1 %v3006_v0 }
0x1390   : > { %2674 = vmatpush3.msra.mxu1 %v3164_v4 }
0x1391   : > { %2675 = vmatprep.subr.mxu1 %v3006_v0 }
0x1392   : > { %2676 = vmatpush3.msra.mxu1 %v3173_v5 }
0x1393   : > { %2677 = vmatprep.subr.mxu1 %v3006_v0 }
0x1394   : > { %2678 = vmatpush3.msra.mxu1 %v3180_v6 }
0x1395   : > { %2689 = vmatprep.subr.mxu1 %v3006_v0 }
0x144d   : > { %v1520_v33 = vpop.f32.mrf.mxu1 }
0x144e   : > { %v1524_v46 = vadd.f32 %v1520_v33, %v3259_v50 }
0x144f   : > { %v2659_v47 = vpop.f32.mrf.mxu1 }
0x1450   : > { %v1525_v24 = vadd.f32 %v3206_v13, %v1524_v46 }
0x1452   : > { %v1526_v48 = vmul.f32 %v1525_v24, %v3208_v17 }
0x1454   : > { %2857 = vtanh.f32 %v1526_v48 }
0x1461   : > { %v2858_v51 = vpop.eup %2857 }
0x1462   : > { %v1528_v52 = vmul.f32 %v2858_v51, %v3208_v17 }
0x1464   : > { %v1529_v53 = vadd.f32 %v1528_v52, %v3213_v22 }
0x1466   : > { %1532 = vrot.lane.b32.xlu0 %v1529_v53, %s3009_s15  ;;  %v1530_v56 = vmul.f32 %v1529_v53, %v1441_v49 }
0x14d8   : > { %v1533_v54 = vpop.permute.xlu0 %1532 }
0x14d9   : > { %v1535_v55 = vmul.f32 %v1533_v54, %v1529_v53 }
0x14db   : > { %1537 = vrot.lane.b32.xlu1 %v1535_v55, %s3010_s16 }
0x154d   : > { %v1538_v57 = vpop.permute.xlu1 %1537 }
0x154e   : > { %v3380_v50 = vadd.f32 %v1538_v57, %v1530_v56 }
0x1550   : > { %2859 = vtanh.f32 %v3380_v50 }
0x155d   : > { %v2860_v11 = vpop.eup %2859 }
0x155e   : > { %1543 = vrot.lane.b32.xlu0 %v2860_v11, %s3009_s15 }
0x15d0   : > { %v1544_v9 = vpop.permute.xlu0 %1543 }
0x15d1   : > { %v1546_v62 = vmul.f32 %v1544_v9, %v1529_v53 }
0x15d3   : > { %1548 = vrot.lane.b32.xlu1 %v1546_v62, %s3010_s16 }
0x1645   : > { %v1549_v1 = vpop.permute.xlu1 %1548 }
0x1646   : > { %2669 = vmatmul.mubr.msk.f32.vlgmr.msra.gmra.mxu0 %vm757_vm4, %v1549_v1  ;;  %2680 = vmatmul.mubr.msk.f32.vlgmr.msra.gmra.mxu1 %vm757_vm4, %v1549_v1  ;;  %v2877_v1 = vld [vmem:[%s3592_s4] ss:$0 sm:$0xff] }
0x1647   : > { %2683 = vmatpush3.msra.mxu0 %v3413_v63  ;;  %2686 = vmatprep.mubr.msk.f32.mxu0 %vm3007_vm0, %v3006_v0 }
0x1648   : > { %2684 = vmatprep.subr.mxu0 %v3006_v0  ;;  %2690 = vmatpush3.msra.mxu1 %v3386_v58 }
0x1649   : > { %2691 = vmatprep.subr.mxu1 %v3006_v0  ;;  %2697 = vmatprep.mubr.msk.f32.mxu1 %vm3007_vm0, %v3006_v0 }
0x164a   : > { %2692 = vmatpush3.msra.mxu1 %v3391_v59  ;;  %2685 = vmatpush3.msra.mxu0 %v3431_v2 }
0x164b   : > { %2693 = vmatprep.subr.mxu1 %v3006_v0  ;;  %2700 = vmatprep.subr.mxu0 %v3006_v0 }
0x164c   : > { %2694 = vmatpush3.msra.mxu1 %v3398_v60 }
0x164d   : > { %2695 = vmatprep.subr.mxu1 %v3006_v0 }
0x164e   : > { %2696 = vmatpush3.msra.mxu1 %v3405_v61 }
0x164f   : > { %2711 = vmatprep.subr.mxu1 %v3006_v0 }
0x1706   : > { %v1618_v29 = vpop.f32.mrf.mxu0  ;;  %v1688_v8 = vpop.f32.mrf.mxu1 }
0x1707   : > { %v3441_v10 = vadd.f32 %v3438_v7, %v1618_v29 }
0x1708   : > { %v2670_v14 = vpop.f32.mrf.mxu0  ;;  %v2681_v15 = vpop.f32.mrf.mxu1 }
0x1709   : > { %2687 = vmatmul.mubr.msk.f32.vlgmr.msra.gmra.mxu0 %vm1692_vm5, %v3441_v10 }
0x170a   : > { %2701 = vmatpush3.msra.mxu0 %v3157_v3  ;;  %2708 = vmatprep.mubr.msk.f32.mxu0 %vm3007_vm0, %v3006_v0 }
0x170b   : > { %2702 = vmatprep.subr.mxu0 %v3006_v0 }
0x170c   : > { %2703 = vmatpush3.msra.mxu0 %v3164_v4 }
0x170d   : > { %2704 = vmatprep.subr.mxu0 %v3006_v0 }
0x170e   : > { %2705 = vmatpush3.msra.mxu0 %v3173_v5 }
0x170f   : > { %2706 = vmatprep.subr.mxu0 %v3006_v0 }
0x1710   : > { %2707 = vmatpush3.msra.mxu0 %v3180_v6 }
0x1711   : > { %2718 = vmatprep.subr.mxu0 %v3006_v0 }
0x17c9   : > { %v1762_v16 = vpop.f32.mrf.mxu0 }
0x17ca   : > { %v1763_v18 = vadd.f32 %v1762_v16, %v1688_v8 }
0x17cb   : > { %v2688_v3 = vpop.f32.mrf.mxu0 }
0x17cc   : > { %v1766_v19 = vadd.f32 %v3206_v13, %v1763_v18 }
0x17ce   : > { %v1767_v20 = vmul.f32 %v1766_v19, %v3208_v17 }
0x17d0   : > { %2861 = vtanh.f32 %v1767_v20 }
0x17dd   : > { %v2862_v21 = vpop.eup %2861 }
0x17de   : > { %v1769_v4 = vmul.f32 %v2862_v21, %v3208_v17 }
0x17e0   : > { %v1770_v12 = vadd.f32 %v1769_v4, %v3213_v22 }
0x17e2   : > { %1773 = vrot.lane.b32.xlu0 %v1770_v12, %s3009_s15  ;;  %v1771_v6 = vmul.f32 %v1770_v12, %v3380_v50 }
0x1854   : > { %v1774_v5 = vpop.permute.xlu0 %1773 }
0x1855   : > { %v1776_v23 = vmul.f32 %v1774_v5, %v1770_v12 }
0x1857   : > { %1778 = vrot.lane.b32.xlu1 %v1776_v23, %s3010_s16 }
0x18c9   : > { %v1779_v25 = vpop.permute.xlu1 %1778 }
0x18ca   : > { %v1781_v26 = vadd.f32 %v1779_v25, %v1771_v6 }
0x18cc   : > { %2863 = vtanh.f32 %v1781_v26 }
0x18d9   : > { %v2864_v27 = vpop.eup %2863 }
0x18da   : > { %1784 = vrot.lane.b32.xlu0 %v2864_v27, %s3009_s15 }
0x194c   : > { %v1785_v28 = vpop.permute.xlu0 %1784 }
0x194d   : > { %v1787_v30 = vmul.f32 %v1785_v28, %v1770_v12 }
0x194f   : > { %1789 = vrot.lane.b32.xlu1 %v1787_v30, %s3010_s16 }
0x19c1   : > { %v1790_v31 = vpop.permute.xlu1 %1789 }
0x19c2   : > { %2698 = vmatmul.mubr.msk.f32.vlgmr.msra.gmra.mxu1 %vm757_vm4, %v1790_v31  ;;  %2709 = vmatmul.mubr.msk.f32.vlgmr.msra.gmra.mxu0 %vm757_vm4, %v1790_v31 }
0x19c3   : > { %2712 = vmatpush3.msra.mxu1 %v3413_v63  ;;  %2715 = vmatprep.mubr.msk.f32.mxu1 %vm3007_vm0, %v3006_v0 }
0x19c4   : > { %2713 = vmatprep.subr.mxu1 %v3006_v0  ;;  %2719 = vmatpush3.msra.mxu0 %v3386_v58 }
0x19c5   : > { %2714 = vmatpush3.msra.mxu1 %v3431_v2  ;;  %2720 = vmatprep.subr.mxu0 %v3006_v0 }
0x19c6   : > { %2729 = vmatprep.subr.mxu1 %v3006_v0  ;;  %2721 = vmatpush3.msra.mxu0 %v3391_v59 }
0x19c7   : > { %2722 = vmatprep.subr.mxu0 %v3006_v0  ;;  %2726 = vmatprep.mubr.msk.f32.mxu0 %vm3007_vm0, %v3006_v0 }
0x19c8   : > { %2723 = vmatpush3.msra.mxu0 %v3398_v60 }
0x19c9   : > { %2724 = vmatprep.subr.mxu0 %v3006_v0 }
0x19ca   : > { %2725 = vmatpush3.msra.mxu0 %v3405_v61 }
0x19cb   : > { %2740 = vmatprep.subr.mxu0 %v3006_v0 }
0x1a82   : > { %v1859_v32 = vpop.f32.mrf.mxu1  ;;  %v1929_v34 = vpop.f32.mrf.mxu0 }
0x1a83   : > { %v3483_v35 = vadd.f32 %v3438_v7, %v1859_v32 }
0x1a84   : > { %v2699_v36 = vpop.f32.mrf.mxu1  ;;  %v2710_v37 = vpop.f32.mrf.mxu0 }
0x1a85   : > { %2716 = vmatmul.mubr.msk.f32.vlgmr.msra.gmra.mxu1 %vm1692_vm5, %v3483_v35 }
0x1a86   : > { %2730 = vmatpush3.msra.mxu1 %v2873_v38  ;;  %2737 = vmatprep.mubr.msk.f32.mxu1 %vm3007_vm0, %v3006_v0 }
0x1a87   : > { %2731 = vmatprep.subr.mxu1 %v3006_v0 }
0x1a88   : > { %2732 = vmatpush3.msra.mxu1 %v2874_v39 }
0x1a89   : > { %2733 = vmatprep.subr.mxu1 %v3006_v0 }
0x1a8a   : > { %2734 = vmatpush3.msra.mxu1 %v2875_v40 }
0x1a8b   : > { %2735 = vmatprep.subr.mxu1 %v3006_v0 }
0x1a8c   : > { %2736 = vmatpush3.msra.mxu1 %v2876_v41 }
0x1a8d   : > { %2747 = vmatprep.subr.mxu1 %v3006_v0 }
0x1b45   : > { %v2002_v49 = vpop.f32.mrf.mxu1 }
0x1b46   : > { %v2003_v42 = vadd.f32 %v2002_v49, %v1929_v34 }
0x1b47   : > { %v2717_v43 = vpop.f32.mrf.mxu1 }
0x1b48   : > { %v2006_v44 = vadd.f32 %v3206_v13, %v2003_v42 }
0x1b4a   : > { %v2007_v45 = vmul.f32 %v2006_v44, %v3208_v17 }
0x1b4c   : > { %2865 = vtanh.f32 %v2007_v45 }
0x1b59   : > { %v2866_v33 = vpop.eup %2865 }
0x1b5a   : > { %v2009_v46 = vmul.f32 %v2866_v33, %v3208_v17 }
0x1b5c   : > { %v2010_v47 = vadd.f32 %v2009_v46, %v3213_v22 }
0x1b5e   : > { %2013 = vrot.lane.b32.xlu0 %v2010_v47, %s3009_s15  ;;  %v2011_v51 = vmul.f32 %v2010_v47, %v1781_v26 }
0x1bd0   : > { %v2014_v24 = vpop.permute.xlu0 %2013 }
0x1bd1   : > { %v2016_v48 = vmul.f32 %v2014_v24, %v2010_v47 }
0x1bd3   : > { %2018 = vrot.lane.b32.xlu1 %v2016_v48, %s3010_s16 }
0x1c45   : > { %v2019_v52 = vpop.permute.xlu1 %2018 }
0x1c46   : > { %v2021_v53 = vadd.f32 %v2019_v52, %v2011_v51 }
0x1c48   : > { %2867 = vtanh.f32 %v2021_v53 }
0x1c55   : > { %v2868_v54 = vpop.eup %2867 }
0x1c56   : > { %2024 = vrot.lane.b32.xlu0 %v2868_v54, %s3009_s15 }
0x1cc8   : > { %v2025_v13 = vpop.permute.xlu0 %2024 }
0x1cc9   : > { %v2027_v55 = vmul.f32 %v2025_v13, %v2010_v47 }
0x1ccb   : > { %2029 = vrot.lane.b32.xlu1 %v2027_v55, %s3010_s16 }
0x1d3d   : > { %v2030_v56 = vpop.permute.xlu1 %2029 }
0x1d3e   : > { %2727 = vmatmul.mubr.msk.f32.vlgmr.msra.gmra.mxu0 %vm757_vm4, %v2030_v56  ;;  %2738 = vmatmul.mubr.msk.f32.vlgmr.msra.gmra.mxu1 %vm757_vm4, %v2030_v56 }
0x1d3f   : > { %2741 = vmatpush3.msra.mxu0 %v3413_v63  ;;  %2744 = vmatprep.mubr.msk.f32.mxu0 %vm3007_vm0, %v3006_v0 }
0x1d40   : > { %2742 = vmatprep.subr.mxu0 %v3006_v0  ;;  %2748 = vmatpush3.msra.mxu1 %v3386_v58 }
0x1d41   : > { %2743 = vmatpush3.msra.mxu0 %v3431_v2  ;;  %2749 = vmatprep.subr.mxu1 %v3006_v0 }
0x1d42   : > { %2750 = vmatpush3.msra.mxu1 %v3391_v59  ;;  %2755 = vmatprep.mubr.msk.f32.mxu1 %vm3007_vm0, %v3006_v0 }
0x1d43   : > { %2751 = vmatprep.subr.mxu1 %v3006_v0 }
0x1d44   : > { %2752 = vmatpush3.msra.mxu1 %v3398_v60 }
0x1d45   : > { %2753 = vmatprep.subr.mxu1 %v3006_v0 }
0x1d46   : > { %2754 = vmatpush3.msra.mxu1 %v3405_v61 }
0x1dfe   : > { %v2099_v57 = vpop.f32.mrf.mxu0  ;;  %v2169_v50 = vpop.f32.mrf.mxu1 }
0x1dff   : > { %v2100_v58 = vadd.f32 %v3438_v7, %v2099_v57 }
0x1e00   : > { %v2728_v11 = vpop.f32.mrf.mxu0  ;;  %v2739_v9 = vpop.f32.mrf.mxu1 }
0x1e01   : > { %2745 = vmatmul.mubr.msk.f32.vlgmr.msra.gmra.mxu0 %vm1692_vm5, %v2100_v58 }
0x1ec1   : > { %v2242_v59 = vpop.f32.mrf.mxu0 }
0x1ec2   : > { %v2243_v62 = vadd.f32 %v2242_v59, %v2169_v50 }
0x1ec3   : > { %v2746_v63 = vpop.f32.mrf.mxu0 }
0x1ec4   : > { %v2246_v60 = vadd.f32 %v2877_v1, %v2243_v62 }
0x1ec6   : > { %v2247_v0 = vmul.f32 %v2246_v60, %v3208_v17 }
0x1ec8   : > { %2869 = vtanh.f32 %v2247_v0 }
0x1ed5   : > { %v2870_v61 = vpop.eup %2869 }
0x1ed6   : > { %v2249_v2 = vmul.f32 %v2870_v61, %v3208_v17 }
0x1ed8   : > { %v2250_v29 = vadd.f32 %v2249_v2, %v3213_v22 }
0x1eda   : > { %2253 = vrot.lane.b32.xlu0 %v2250_v29, %s3009_s15  ;;  %v2251_v15 = vmul.f32 %v2250_v29, %v2021_v53 }
0x1f4c   : > { %v2254_v8 = vpop.permute.xlu0 %2253 }
0x1f4d   : > { %v2256_v14 = vmul.f32 %v2254_v8, %v2250_v29 }
0x1f4f   : > { %2258 = vrot.lane.b32.xlu1 %v2256_v14, %s3010_s16 }
0x1fc1   : > { %v2259_v16 = vpop.permute.xlu1 %2258 }
0x1fc2   : > { %v2261_v18 = vadd.f32 %v2259_v16, %v2251_v15 }
0x1fc4   : > { %2871 = vtanh.f32 %v2261_v18 }
0x1fd1   : > { %v2872_v3 = vpop.eup %2871 }
0x1fd2   : > { %2264 = vrot.lane.b32.xlu0 %v2872_v3, %s3009_s15  ;;  %s297_s15 = sand.u32 1, %s2990_s25  }
0x1fd3   : > { %s2463_s17 = sshll.u32 %s297_s15, 3  ;;  %s2361_s22 = scalar_lea.sflag [#allocation5], %s297_s15 }
0x1fd4   : > { %s299_s18 = scalar_lea.vmem [#allocation8], %s2463_s17 }
0x1fd5   : > { %s2374_s19 = sshll.u32 %s299_s18, 4  ;;  %s2375_s19 = int_to_ptr.vmem [resolvable:$true] %s2374_s19 }
0x1fd6   : > { %2343 = vrot.lane.b32.xlu0 %v3483_v35, %s3011_s9  ;;  %s2930_s28 = scalar_lea.vmem %s2375_s19, 128  ;;  %p2937_p11 = scmp.lt.s32.totalorder %s2375_s19, %s2935_s29 }
0x1fd7   : > { %p2931_p12 = scmp.ne.s32.totalorder %s2375_s19, %s2930_s28  ;;  %p2938_p0 = scmp.lt.s32.totalorder %s2936_s8, %s2930_s28 }
0x1fd9   : > { %p2932_p7 = pnand %p2931_p12, %p3092_p5  ;;  %p2939_p1 = por %p2938_p0, %p2937_p11 }
0x1fdb   : > { %p2933_p8 = pneg %p2932_p7 }
0x1fdd   : > { %p2940_p3 = pnand %p2939_p1, %p2933_p8 }
0x2044   : > { %v2265_v17 = vpop.permute.xlu0 %2264 }
0x2045   : > { %v2267_v22 = vmul.f32 %v2265_v17, %v2250_v29 }
0x2047   : > { %2269 = vrot.lane.b32.xlu1 %v2267_v22, %s3010_s16 }
0x2048   : > { %v2344_v12 = vpop.permute.xlu0 %2343 }
0x2049   : > { %v2353_v23 = vsel %vm1692_vm5, %v3441_v10, %v2344_v12 }
0x204b   : > { %2346 = vrot.lane.b32.xlu1 %v2100_v58, %s3010_s16 }
0x20b9   : > { %v2270_v19 = vpop.permute.xlu1 %2269 }
0x20ba   : > { %2756 = vmatmul.mubr.msk.f32.vlgmr.msra.gmra.mxu1 %vm757_vm4, %v2270_v19 }
0x20bd   : > { %v2347_v5 = vpop.permute.xlu1 %2346 }
0x20be   : > { %v2354_v6 = vsel %vm757_vm4, %v2353_v23, %v2347_v5 }
0x217a   : > { %v2339_v20 = vpop.f32.mrf.mxu1 }
0x217b   : > { %v2340_v21 = vadd.f32 %v3438_v7, %v2339_v20 }
0x217c   : > { %v2757_v4 = vpop.f32.mrf.mxu1 }
0x217d   : > { %2350 = vrot.lane.b32.xlu0 %v2340_v21, %s3012_s14 }
0x21ef   : > { %v2351_v25 = vpop.permute.xlu0 %2350 }
0x21f0   : > { %v2356_v7 = vsel %vm2355_vm6, %v2354_v6, %v2351_v25 }
0x21f1   : > { %v2358_v26 = vsel %vm2357_vm7, %v2356_v7, 0.0 }
0x21f2   : > { %2359 = vst [vmem:[%s299_s18] sm:$0xff] %v2358_v26 }
0x21f3   : > { %2943 = shalt.err (!%p2940_p3)
}
0x21f4   : > { %s2944_s9 = scalar_lea.hbm %s3553_s21, 128  ;;  %s2948_s17 = scalar_lea.hbm %s3595_s7, 256 }
0x21f5   : > { %p2945_p2 = scmp.ne.s32.totalorder %s3553_s21, %s2944_s9  ;;  %p2949_p6 = scmp.lt.s32.totalorder %s3553_s21, %s3595_s7 }
0x21f6   : > { %p2950_p9 = scmp.lt.s32.totalorder %s2948_s17, %s2944_s9 }
0x21f7   : > { %p2946_p4 = pnand %p2945_p2, %p3092_p5 }
0x21f8   : > { %p2951_p10 = por %p2950_p9, %p2949_p6 }
0x21f9   : > { %p2947_p13 = pneg %p2946_p4 }
0x21fb   : > { %p2952_p12 = pnand %p2951_p10, %p2947_p13 }
0x21fd   : > { %2955 = shalt.err (!%p2952_p12)
}
0x21fe   : > { %2766 = dma.vmem_to_hbm [thread:$0]  (%p3092_p5), %s2375_s19, 128, %s3553_s21, %s2361_s22  }
0x21ff PF: > { %p2783_p7 = scmp.ge.s32.totalorder %s2998_s27, 2  ;;  %s2386_s16 = sand.u32 1, %s2986_s24  }
0x2200   : > { %p3605_p8 = scmp.ne.s32.totalorder %s3598_s12, 0  ;;  %s2387_s20 = scalar_lea.sflag [#allocation5], %s2386_s16 }
0x2202   : > { %p2776_p11 = pnand %p2783_p7, %p3605_p8 }
0x2204   : > { %p2777_p0 = pneg %p2776_p11 }
0x2206   : > { %2981 = dma.done.wait (%p2777_p0), %s2387_s20, 128  }
0x2207   : > { %2983 = vsyncadd (%p2777_p0), %s2387_s20, 4294967168  ;;  %p19_p1 = scmp.ge.s32.totalorder %s3079_s30, 4   ;;  %s3606_s24 = smov %s2990_s25 }
0x2208   : > { %s3607_s25 = smov %s2994_s26  ;;  %s3608_s26 = smov %s3090_s10 }
0x2209   : > { %s3609_s27 = smov %s3079_s30  ;;  %21 = sbr.rel (!%p19_p1) target bundleno = 5 (0x5), region = 92 }
0x220e   :  { %2392 = vsyncpa [#allocation4], 1 }
0x220f   :  { %2394 = vsyncpa [#allocation4 + $0x1], 1 }
0x2210   :  { %2395 = vsyncpa [#allocation7], 1 }
0x2211   :  { %2396 = vsyncpa [#allocation5], 1 }
0x2212   :  { %2398 = vsyncpa [#allocation5 + $0x1], 1 }

</bundles_post_ra>
